<compile_context>
chip_gen: v7x
topology: tpu7x:2x2x1
jax: 0.10.0
libtpu: 0.0.40
codegen_flags: <defaults>
</compile_context>

<pallas_src>
import math
import functools

import jax
import jax.numpy as jnp
from jax import lax
from jax.experimental import pallas as pl
from jax.experimental.pallas import tpu as pltpu


# ----------------------------------------------------------------------------
# Pallas kernel: flash-style topological attention, all heads per grid step
# ----------------------------------------------------------------------------
def _flash_topo_kernel(q_ref, k_ref, v_ref, top_ref, o_ref,
                       m_sc, l_sc, acc_sc, *, scale, n_heads, d_attn):
    """One grid step = (one batch element) x (one q tile) x (one k tile), all heads.

    Block shapes:
      q_ref   : (1, tq, H*d)     k_ref / v_ref : (1, tk, H*d)
      top_ref : (1, tq, tk)      o_ref         : (1, tq, H*d)
    Scratch (persists across the k grid axis):
      m_sc / l_sc : (H, tq, 1) f32     acc_sc : (H, tq, d) f32
    """
    ki = pl.program_id(2)

    @pl.when(ki == 0)
    def _init():
        m_sc[...] = jnp.full_like(m_sc, -jnp.inf)
        l_sc[...] = jnp.zeros_like(l_sc)
        acc_sc[...] = jnp.zeros_like(acc_sc)

    # Keep native dtype for the MXU; fold 1/sqrt(d_attn) into Q (O(tq * H*d) multiplies).
    q = q_ref[0] * scale                     # (tq, H*d)
    k = k_ref[0]                             # (tk, H*d)
    v = v_ref[0]                             # (tk, H*d)
    # Bias is shared by every head of this batch element: loaded once per (q, k) tile.
    top = top_ref[0].astype(jnp.float32)     # (tq, tk), softmax math in f32

    for h in range(n_heads):                 # static unroll over heads
        sl = slice(h * d_attn, (h + 1) * d_attn)
        qh, kh, vh = q[:, sl], k[:, sl], v[:, sl]
        # QK^T contracting the last axes directly (no transposed copy of K); f32 accumulate.
        s = lax.dot_general(qh, kh, (((1,), (1,)), ((), ())),
                            preferred_element_type=jnp.float32) + top   # (tq, tk)
        m_prev = m_sc[h]                                                 # (tq, 1)
        m_new = jnp.maximum(m_prev, jnp.max(s, axis=-1, keepdims=True))
        alpha = jnp.exp(m_prev - m_new)
        p = jnp.exp(s - m_new)                                           # (tq, tk)
        l_sc[h] = alpha * l_sc[h] + jnp.sum(p, axis=-1, keepdims=True)
        acc_sc[h] = alpha * acc_sc[h] + jnp.dot(
            p.astype(vh.dtype), vh, preferred_element_type=jnp.float32)
        m_sc[h] = m_new

    @pl.when(ki == pl.num_programs(2) - 1)
    def _finalize():
        # Exact normalization (approx reciprocal caused the previous mismatch), assembled
        # into one head-concatenated, lane-dense (tq, H*d) slab -> a single dense store.
        pieces = [acc_sc[h] / l_sc[h] for h in range(n_heads)]
        o_ref[0] = jnp.concatenate(pieces, axis=-1).astype(o_ref.dtype)


def _choose_seq_block(s, target, align):
    """Largest multiple of `align` that divides s and is <= target; else the full axis."""
    if s <= target:
        return s
    best = None
    t = align
    while t <= target:
        if s % t == 0:
            best = t
        t += align
    return best if best is not None else s


def topological_attention(Q, K, V, top, *, n_heads, d_attn,
                          block_q=512, block_k=512,
                          vmem_limit_bytes=32 * 1024 * 1024):
    """Pallas implementation of (multi-head) TopologicalAttention.

    Q, K, V: [B, S, n_heads * d_attn]  (head h occupies columns [h*d_attn, (h+1)*d_attn))
    top    : [B, S, S]  bias shared by all heads of a batch element
    Returns  [B, S, n_heads * d_attn]  (same head-concatenated layout).
    """
    B, S, HD = Q.shape
    assert HD == n_heads * d_attn
    assert K.shape == (B, S, HD) and V.shape == (B, S, HD)
    assert top.shape == (B, S, S)

    # Sublane alignment: 8 rows for f32 blocks, 16 for bf16/fp16 (sublane packing).
    min_itemsize = min(jnp.dtype(Q.dtype).itemsize, jnp.dtype(top.dtype).itemsize)
    sub_align = 8 if min_itemsize >= 4 else 16
    tq = _choose_seq_block(S, block_q, sub_align)   # second-to-last dim of Q/top/out blocks
    tk = _choose_seq_block(S, block_k, 128)         # last dim of the top block
    assert S % tq == 0 and S % tk == 0

    scale = 1.0 / math.sqrt(float(d_attn))
    kernel = functools.partial(_flash_topo_kernel, scale=scale,
                               n_heads=n_heads, d_attn=d_attn)
    # Grid: batch x q-tiles x k-tiles.  All heads live inside one step (bias reuse).
    # v7x note: the "parallel" extent B * (S // tq) should be >= 2 (ideally even) so both
    # TensorCores get work; with B >= 2 (as here) that always holds.
    grid = (B, S // tq, S // tk)

    def build(top_pipeline_mode):
        top_kwargs = {} if top_pipeline_mode is None else {"pipeline_mode": top_pipeline_mode}
        return pl.pallas_call(
            kernel,
            out_shape=jax.ShapeDtypeStruct((B, S, HD), V.dtype),
            grid_spec=pltpu.PrefetchScalarGridSpec(
                num_scalar_prefetch=0,
                grid=grid,
                in_specs=[
                    pl.BlockSpec((1, tq, HD), lambda b, qi, ki: (b, qi, 0)),
                    pl.BlockSpec((1, tk, HD), lambda b, qi, ki: (b, ki, 0)),
                    pl.BlockSpec((1, tk, HD), lambda b, qi, ki: (b, ki, 0)),
                    # Bias is the dominant per-step DMA stream: triple-buffer it if possible.
                    pl.BlockSpec((1, tq, tk), lambda b, qi, ki: (b, qi, ki), **top_kwargs),
                ],
                out_specs=pl.BlockSpec((1, tq, HD), lambda b, qi, ki: (b, qi, 0)),
                scratch_shapes=[
                    pltpu.VMEM((n_heads, tq, 1), jnp.float32),       # running max
                    pltpu.VMEM((n_heads, tq, 1), jnp.float32),       # running denom
                    pltpu.VMEM((n_heads, tq, d_attn), jnp.float32),  # accumulator
                ],
            ),
            compiler_params=pltpu.CompilerParams(
                dimension_semantics=("parallel", "parallel", "arbitrary"),
                vmem_limit_bytes=vmem_limit_bytes,
            ),
        )

    if hasattr(pl, "Buffered"):
        try:
            return build(pl.Buffered(3))(Q, K, V, top)
        except Exception:
            # Fall back to default double-buffering if pipeline_mode is unsupported
            # (e.g. older Pallas or interpret mode); any genuine error re-raises below.
            pass
    return build(None)(Q, K, V, top)


# ----------------------------------------------------------------------------
# Pure-JAX reference for the attention core (head-concatenated layout)
# ----------------------------------------------------------------------------
def _topo_attention_reference(Q, K, V, top, n_heads, d_attn):
    B, S, _ = Q.shape

    def split(x):
        return x.reshape(B, S, n_heads, d_attn).transpose(0, 2, 1, 3)   # (B,H,S,d)

    q, k, v = split(Q), split(K), split(V)
    s = jnp.matmul(q, jnp.swapaxes(k, -1, -2)) / math.sqrt(float(d_attn)) + top[:, None]
    o = jnp.matmul(jax.nn.softmax(s, axis=-1), v)                        # (B,H,S,d)
    return o.transpose(0, 2, 1, 3).reshape(B, S, n_heads * d_attn)


# ----------------------------------------------------------------------------
# MolTransformer forward (JAX wrapper calling the Pallas attention kernel)
# ----------------------------------------------------------------------------
def _linear_params(key, d_in, d_out, dtype=jnp.float32):
    kw, kb = jax.random.split(key)
    bound = 1.0 / math.sqrt(d_in)
    return {"w": jax.random.uniform(kw, (d_in, d_out), dtype, -bound, bound),
            "b": jax.random.uniform(kb, (d_out,), dtype, -bound, bound)}


def _layernorm_params(key, d, dtype=jnp.float32):
    kg, kb = jax.random.split(key)
    return {"gamma": 1.0 + 0.1 * jax.random.normal(kg, (d,), dtype),
            "beta": 0.1 * jax.random.normal(kb, (d,), dtype)}


def init_mol_transformer_params(key, d_model, n_encoders, n_heads, d_attn, d_embed):
    keys = jax.random.split(key, 2 + n_encoders)
    params = {
        "init_linear": _linear_params(keys[0], d_embed, d_model),
        "init_ln": _layernorm_params(keys[1], d_model),
        "encoders": [],
    }
    for i in range(n_encoders):
        ek = jax.random.split(keys[2 + i], 9)
        params["encoders"].append({
            "attn": {
                "top": _linear_params(ek[0], 16, 1),
                "w_Q": _linear_params(ek[1], d_model, n_heads * d_attn),
                "w_K": _linear_params(ek[2], d_model, n_heads * d_attn),
                "w_V": _linear_params(ek[3], d_model, n_heads * d_attn),
                "w_O": _linear_params(ek[4], n_heads * d_attn, d_model),
            },
            "ln1": _layernorm_params(ek[5], d_model),
            "ff": _linear_params(ek[6], d_model, 4 * d_model),
            "ff2": _linear_params(ek[7], 4 * d_model, d_model),
            "ln2": _layernorm_params(ek[8], d_model),
        })
    return params


def _linear(x, p):
    return jnp.matmul(x, p["w"]) + p["b"]


def _layer_norm(x, p, eps=1e-5):
    mu = jnp.mean(x, axis=-1, keepdims=True)
    var = jnp.mean((x - mu) ** 2, axis=-1, keepdims=True)   # biased, like torch.nn.LayerNorm
    return (x - mu) * lax.rsqrt(var + eps) * p["gamma"] + p["beta"]


def _multi_head_topo_attention(p, x, top_bias, *, n_head, d_attn, use_pallas):
    """top_bias is the already-projected (B, S, S) bias for this encoder."""
    # Q/K/V stay in (B, S, H*d_attn) layout (same column-to-head mapping as the PyTorch
    # reshape/permute); no (B, H, S, d) transposes are materialized in HBM.
    Q = _linear(x, p["w_Q"])
    K = _linear(x, p["w_K"])
    V = _linear(x, p["w_V"])
    if use_pallas:
        O = topological_attention(Q, K, V, top_bias, n_heads=n_head, d_attn=d_attn)
    else:
        O = _topo_attention_reference(Q, K, V, top_bias, n_head, d_attn)
    return _linear(O, p["w_O"])


def _encoder_forward(p, x, top_bias, *, n_head, d_attn, use_pallas):
    attn_out = _multi_head_topo_attention(p["attn"], x, top_bias, n_head=n_head,
                                          d_attn=d_attn, use_pallas=use_pallas)
    res1 = attn_out + x
    out = _layer_norm(res1, p["ln1"])
    out = _linear(_linear(out, p["ff"]), p["ff2"])
    out = jax.nn.silu(out + res1)
    return _layer_norm(out, p["ln2"])


def mol_transformer_forward(params, graph, top, *, n_heads, d_attn, use_pallas=True,
                            attn_bias_dtype=None):
    # TODO(synk): Preprocess (use_pre=True) and from_config (config-file / host IO) are not
    # representable in-kernel and are omitted; also PyTorch's .squeeze() on the top
    # projection would additionally squeeze the batch dim when B == 1 -- only the B > 1
    # behaviour is replicated here.
    init = _layer_norm(_linear(graph, params["init_linear"]), params["init_ln"])

    # Fuse every encoder's 16->1 bias projection into a single 16->n_encoders matmul so the
    # [B, S, S, 16] feature tensor is read from HBM once; emit the per-encoder bias slabs
    # contiguously as (n_encoders, B, S, S).
    W = jnp.concatenate([enc["attn"]["top"]["w"] for enc in params["encoders"]], axis=-1)
    bvec = jnp.concatenate([enc["attn"]["top"]["b"] for enc in params["encoders"]], axis=0)
    top_all = jnp.einsum("bqkf,fe->ebqk", top, W) + bvec[:, None, None, None]
    if attn_bias_dtype is not None:          # e.g. jnp.bfloat16 to halve the bias HBM stream
        top_all = top_all.astype(attn_bias_dtype)

    out = init
    # Faithful to the PyTorch module: every encoder consumes `init` (not the previous
    # encoder's output); only the last encoder's output is returned.
    for i, enc in enumerate(params["encoders"]):
        out = _encoder_forward(enc, init, top_all[i], n_head=n_heads, d_attn=d_attn,
                               use_pallas=use_pallas)
    return out


# ----------------------------------------------------------------------------
# Smoke test
# ----------------------------------------------------------------------------
if __name__ == "__main__":
    B, S = 2, 8
    d_model, n_encoders, n_heads, d_attn, d_embed = 32, 2, 8, 16, 24
    HD = n_heads * d_attn

    key = jax.random.PRNGKey(0)
    kp, kg, kt, ka = jax.random.split(key, 4)
    params = init_mol_transformer_params(kp, d_model, n_encoders, n_heads, d_attn, d_embed)
    graph = jax.random.normal(kg, (B, S, d_embed), dtype=jnp.float32)
    top = jax.random.normal(kt, (B, S, S, 16), dtype=jnp.float32)

    # 1) standalone kernel check against a pure-JAX reference (single-tile case, S=8).
    kq, kk, kv, ktt = jax.random.split(ka, 4)
    Qx = jax.random.normal(kq, (B, S, HD), dtype=jnp.float32)
    Kx = jax.random.normal(kk, (B, S, HD), dtype=jnp.float32)
    Vx = jax.random.normal(kv, (B, S, HD), dtype=jnp.float32)
    Tx = jax.random.normal(ktt, (B, S, S), dtype=jnp.float32)
    out1 = jax.block_until_ready(
        topological_attention(Qx, Kx, Vx, Tx, n_heads=n_heads, d_attn=d_attn))
    ref1 = _topo_attention_reference(Qx, Kx, Vx, Tx, n_heads, d_attn)
    assert out1.shape == ref1.shape
    assert jnp.allclose(out1, ref1, atol=5e-3, rtol=5e-3), (
        "attention kernel mismatch: max abs err "
        f"{float(jnp.max(jnp.abs(out1 - ref1)))}")

    # 2) multi-tile check: exercises the online-softmax accumulation across k tiles.
    S2 = 256
    kq2, kk2, kv2, kt2 = jax.random.split(jax.random.fold_in(ka, 1), 4)
    Q2 = jax.random.normal(kq2, (B, S2, HD), dtype=jnp.float32)
    K2 = jax.random.normal(kk2, (B, S2, HD), dtype=jnp.float32)
    V2 = jax.random.normal(kv2, (B, S2, HD), dtype=jnp.float32)
    T2 = jax.random.normal(kt2, (B, S2, S2), dtype=jnp.float32)
    out2 = jax.block_until_ready(
        topological_attention(Q2, K2, V2, T2, n_heads=n_heads, d_attn=d_attn,
                              block_q=128, block_k=128))
    ref2 = _topo_attention_reference(Q2, K2, V2, T2, n_heads, d_attn)
    assert jnp.allclose(out2, ref2, atol=5e-3, rtol=5e-3), (
        "multi-tile attention kernel mismatch: max abs err "
        f"{float(jnp.max(jnp.abs(out2 - ref2)))}")

    # 3) full MolTransformer forward (Pallas attention inside) vs pure-JAX forward.
    out = jax.block_until_ready(
        mol_transformer_forward(params, graph, top, n_heads=n_heads, d_attn=d_attn,
                                use_pallas=True))
    ref = mol_transformer_forward(params, graph, top, n_heads=n_heads, d_attn=d_attn,
                                  use_pallas=False)
    assert out.shape == (B, S, d_model)
    assert jnp.allclose(out, ref, atol=1e-2, rtol=1e-2), (
        "MolTransformer forward mismatch: max abs err "
        f"{float(jnp.max(jnp.abs(out - ref)))}")

    print("KERNEL_OK")
</pallas_src>

<mosaic_0001>
module attributes {stable_mosaic.version = 11 : i64} {
  func.func @_flash_topo_kernel(%arg0: i32, %arg1: i32, %arg2: i32, %arg3: memref<1x8x128xf32, #tpu.memory_space<vmem>>, %arg4: memref<1x8x128xf32, #tpu.memory_space<vmem>>, %arg5: memref<1x8x128xf32, #tpu.memory_space<vmem>>, %arg6: memref<1x8x8xf32, #tpu.memory_space<vmem>>, %arg7: memref<1x8x128xf32, #tpu.memory_space<vmem>>, %arg8: memref<8x8x1xf32, #tpu.memory_space<vmem>>, %arg9: memref<8x8x1xf32, #tpu.memory_space<vmem>>, %arg10: memref<8x8x16xf32, #tpu.memory_space<vmem>>) attributes {dimension_semantics = [#tpu.dimension_semantics<parallel>, #tpu.dimension_semantics<parallel>, #tpu.dimension_semantics<arbitrary>], iteration_bounds = array<i64: 2, 1, 1>, scalar_prefetch = 0 : i64, scratch_operands = 3 : i64, tpu.core_type = #tpu.core_type<tc>, window_params = [{transform_indices = @transform_0, window_bounds = array<i64: 1, 8, 128>}, {transform_indices = @transform_1, window_bounds = array<i64: 1, 8, 128>}, {transform_indices = @transform_2, window_bounds = array<i64: 1, 8, 128>}, {transform_indices = @transform_3, window_bounds = array<i64: 1, 8, 8>}, {transform_indices = @transform_4, window_bounds = array<i64: 1, 8, 128>}]} {
    %c0_i32 = arith.constant 0 : i32
    %0 = arith.cmpi eq, %arg2, %c0_i32 : i32
    %1 = arith.extui %0 : i1 to i32
    %c0_i32_0 = arith.constant 0 : i32
    %2 = arith.cmpi ne, %1, %c0_i32_0 : i32
    scf.if %2 {
      %cst_183 = arith.constant 0xFF800000 : f32
      %304 = vector.broadcast %cst_183 : f32 to vector<8x8x1xf32>
      %c0_184 = arith.constant 0 : index
      %c0_185 = arith.constant 0 : index
      %c0_186 = arith.constant 0 : index
      %305 = vector.load %arg8[%c0_184, %c0_185, %c0_186] : memref<8x8x1xf32, #tpu.memory_space<vmem>>, vector<8x8x1xf32>
      tpu.vector_store %arg8[%c0_184, %c0_185, %c0_186], %304 {strides = array<i32>} : memref<8x8x1xf32, #tpu.memory_space<vmem>>, vector<8x8x1xf32>,
      %cst_187 = arith.constant 0.000000e+00 : f32
      %306 = vector.broadcast %cst_187 : f32 to vector<8x8x1xf32>
      %c0_188 = arith.constant 0 : index
      %c0_189 = arith.constant 0 : index
      %c0_190 = arith.constant 0 : index
      %307 = vector.load %arg9[%c0_188, %c0_189, %c0_190] : memref<8x8x1xf32, #tpu.memory_space<vmem>>, vector<8x8x1xf32>
      tpu.vector_store %arg9[%c0_188, %c0_189, %c0_190], %306 {strides = array<i32>} : memref<8x8x1xf32, #tpu.memory_space<vmem>>, vector<8x8x1xf32>,
      %cst_191 = arith.constant 0.000000e+00 : f32
      %308 = vector.broadcast %cst_191 : f32 to vector<8x8x16xf32>
      %c0_192 = arith.constant 0 : index
      %c0_193 = arith.constant 0 : index
      %c0_194 = arith.constant 0 : index
      %309 = vector.load %arg10[%c0_192, %c0_193, %c0_194] : memref<8x8x16xf32, #tpu.memory_space<vmem>>, vector<8x8x16xf32>
      tpu.vector_store %arg10[%c0_192, %c0_193, %c0_194], %308 {strides = array<i32>} : memref<8x8x16xf32, #tpu.memory_space<vmem>>, vector<8x8x16xf32>,
    } else {
    }
    %c0 = arith.constant 0 : index
    %c0_1 = arith.constant 0 : index
    %c0_2 = arith.constant 0 : index
    %3 = vector.load %arg3[%c0, %c0_1, %c0_2] : memref<1x8x128xf32, #tpu.memory_space<vmem>>, vector<1x8x128xf32>
    %4 = vector.shape_cast %3 : vector<1x8x128xf32> to vector<8x128xf32>
    %cst = arith.constant 2.500000e-01 : f32
    %5 = vector.broadcast %cst : f32 to vector<8x128xf32>
    %6 = arith.mulf %4, %5 : vector<8x128xf32>
    %c0_3 = arith.constant 0 : index
    %c0_4 = arith.constant 0 : index
    %c0_5 = arith.constant 0 : index
    %7 = vector.load %arg4[%c0_3, %c0_4, %c0_5] : memref<1x8x128xf32, #tpu.memory_space<vmem>>, vector<1x8x128xf32>
    %8 = vector.shape_cast %7 : vector<1x8x128xf32> to vector<8x128xf32>
    %c0_6 = arith.constant 0 : index
    %c0_7 = arith.constant 0 : index
    %c0_8 = arith.constant 0 : index
    %9 = vector.load %arg5[%c0_6, %c0_7, %c0_8] : memref<1x8x128xf32, #tpu.memory_space<vmem>>, vector<1x8x128xf32>
    %10 = vector.shape_cast %9 : vector<1x8x128xf32> to vector<8x128xf32>
    %c0_9 = arith.constant 0 : index
    %c0_10 = arith.constant 0 : index
    %c0_11 = arith.constant 0 : index
    %11 = vector.load %arg6[%c0_9, %c0_10, %c0_11] : memref<1x8x8xf32, #tpu.memory_space<vmem>>, vector<1x8x8xf32>
    %12 = vector.shape_cast %11 : vector<1x8x8xf32> to vector<8x8xf32>
    %13 = vector.extract_strided_slice %6 {offsets = [0, 0], sizes = [8, 16], strides = [1, 1]} : vector<8x128xf32> to vector<8x16xf32>
    %14 = vector.extract_strided_slice %8 {offsets = [0, 0], sizes = [8, 16], strides = [1, 1]} : vector<8x128xf32> to vector<8x16xf32>
    %15 = vector.extract_strided_slice %10 {offsets = [0, 0], sizes = [8, 16], strides = [1, 1]} : vector<8x128xf32> to vector<8x16xf32>
    %cst_12 = arith.constant dense<0.000000e+00> : vector<8x8xf32>
    %16 = tpu.matmul %13, %14, %cst_12 {dimension_numbers = #tpu.dot_dimension_numbers<[1], [1], [0], [0], [0, 0, 1, 0], [], []>} : vector<8x16xf32>, vector<8x16xf32>, vector<8x8xf32> -> vector<8x8xf32>
    %17 = arith.addf %16, %12 : vector<8x8xf32>
    %c0_13 = arith.constant 0 : index
    %c0_14 = arith.constant 0 : index
    %c0_15 = arith.constant 0 : index
    %18 = vector.load %arg8[%c0_13, %c0_14, %c0_15] : memref<8x8x1xf32, #tpu.memory_space<vmem>>, vector<1x8x1xf32>
    %19 = vector.shape_cast %18 : vector<1x8x1xf32> to vector<8x1xf32>
    %cst_16 = arith.constant dense<0xFF800000> : vector<8xf32>
    %20 = vector.multi_reduction <maximumf>, %17, %cst_16 [1] : vector<8x8xf32> to vector<8xf32>
    %21 = vector.shape_cast %20 : vector<8xf32> to vector<8x1xf32>
    %22 = arith.maximumf %19, %21 : vector<8x1xf32>
    %23 = arith.subf %19, %22 : vector<8x1xf32>
    %24 = math.exp %23 : vector<8x1xf32>
    %25 = vector.broadcast %22 : vector<8x1xf32> to vector<8x8xf32>
    %26 = arith.subf %17, %25 : vector<8x8xf32>
    %27 = math.exp %26 : vector<8x8xf32>
    %c0_17 = arith.constant 0 : index
    %c0_18 = arith.constant 0 : index
    %c0_19 = arith.constant 0 : index
    %28 = vector.load %arg9[%c0_17, %c0_18, %c0_19] : memref<8x8x1xf32, #tpu.memory_space<vmem>>, vector<1x8x1xf32>
    %29 = vector.shape_cast %28 : vector<1x8x1xf32> to vector<8x1xf32>
    %30 = arith.mulf %24, %29 : vector<8x1xf32>
    %cst_20 = arith.constant dense<0.000000e+00> : vector<8xf32>
    %31 = vector.multi_reduction <add>, %27, %cst_20 [1] : vector<8x8xf32> to vector<8xf32>
    %32 = vector.shape_cast %31 : vector<8xf32> to vector<8x1xf32>
    %33 = arith.addf %30, %32 : vector<8x1xf32>
    %c0_21 = arith.constant 0 : index
    %c0_22 = arith.constant 0 : index
    %c0_23 = arith.constant 0 : index
    %34 = vector.load %arg9[%c0_21, %c0_22, %c0_23] : memref<8x8x1xf32, #tpu.memory_space<vmem>>, vector<1x8x1xf32>
    %35 = vector.shape_cast %34 : vector<1x8x1xf32> to vector<8x1xf32>
    %36 = vector.shape_cast %33 : vector<8x1xf32> to vector<1x8x1xf32>
    tpu.vector_store %arg9[%c0_21, %c0_22, %c0_23], %36 {strides = array<i32>} : memref<8x8x1xf32, #tpu.memory_space<vmem>>, vector<1x8x1xf32>,
    %c0_24 = arith.constant 0 : index
    %c0_25 = arith.constant 0 : index
    %c0_26 = arith.constant 0 : index
    %37 = vector.load %arg10[%c0_24, %c0_25, %c0_26] : memref<8x8x16xf32, #tpu.memory_space<vmem>>, vector<1x8x16xf32>
    %38 = vector.shape_cast %37 : vector<1x8x16xf32> to vector<8x16xf32>
    %39 = vector.broadcast %24 : vector<8x1xf32> to vector<8x16xf32>
    %40 = arith.mulf %39, %38 : vector<8x16xf32>
    %cst_27 = arith.constant dense<0.000000e+00> : vector<8x16xf32>
    %41 = tpu.matmul %27, %15, %cst_27 {dimension_numbers = #tpu.dot_dimension_numbers<[1], [0], [0], [1], [0, 0, 1, 1], [], []>} : vector<8x8xf32>, vector<8x16xf32>, vector<8x16xf32> -> vector<8x16xf32>
    %42 = arith.addf %40, %41 : vector<8x16xf32>
    %c0_28 = arith.constant 0 : index
    %c0_29 = arith.constant 0 : index
    %c0_30 = arith.constant 0 : index
    %43 = vector.load %arg10[%c0_28, %c0_29, %c0_30] : memref<8x8x16xf32, #tpu.memory_space<vmem>>, vector<1x8x16xf32>
    %44 = vector.shape_cast %43 : vector<1x8x16xf32> to vector<8x16xf32>
    %45 = vector.shape_cast %42 : vector<8x16xf32> to vector<1x8x16xf32>
    tpu.vector_store %arg10[%c0_28, %c0_29, %c0_30], %45 {strides = array<i32>} : memref<8x8x16xf32, #tpu.memory_space<vmem>>, vector<1x8x16xf32>,
    %c0_31 = arith.constant 0 : index
    %c0_32 = arith.constant 0 : index
    %c0_33 = arith.constant 0 : index
    %46 = vector.load %arg8[%c0_31, %c0_32, %c0_33] : memref<8x8x1xf32, #tpu.memory_space<vmem>>, vector<1x8x1xf32>
    %47 = vector.shape_cast %46 : vector<1x8x1xf32> to vector<8x1xf32>
    %48 = vector.shape_cast %22 : vector<8x1xf32> to vector<1x8x1xf32>
    tpu.vector_store %arg8[%c0_31, %c0_32, %c0_33], %48 {strides = array<i32>} : memref<8x8x1xf32, #tpu.memory_space<vmem>>, vector<1x8x1xf32>,
    %49 = vector.extract_strided_slice %6 {offsets = [0, 16], sizes = [8, 16], strides = [1, 1]} : vector<8x128xf32> to vector<8x16xf32>
    %50 = vector.extract_strided_slice %8 {offsets = [0, 16], sizes = [8, 16], strides = [1, 1]} : vector<8x128xf32> to vector<8x16xf32>
    %51 = vector.extract_strided_slice %10 {offsets = [0, 16], sizes = [8, 16], strides = [1, 1]} : vector<8x128xf32> to vector<8x16xf32>
    %cst_34 = arith.constant dense<0.000000e+00> : vector<8x8xf32>
    %52 = tpu.matmul %49, %50, %cst_34 {dimension_numbers = #tpu.dot_dimension_numbers<[1], [1], [0], [0], [0, 0, 1, 0], [], []>} : vector<8x16xf32>, vector<8x16xf32>, vector<8x8xf32> -> vector<8x8xf32>
    %53 = arith.addf %52, %12 : vector<8x8xf32>
    %c1 = arith.constant 1 : index
    %c0_35 = arith.constant 0 : index
    %c0_36 = arith.constant 0 : index
    %54 = vector.load %arg8[%c1, %c0_35, %c0_36] : memref<8x8x1xf32, #tpu.memory_space<vmem>>, vector<1x8x1xf32>
    %55 = vector.shape_cast %54 : vector<1x8x1xf32> to vector<8x1xf32>
    %cst_37 = arith.constant dense<0xFF800000> : vector<8xf32>
    %56 = vector.multi_reduction <maximumf>, %53, %cst_37 [1] : vector<8x8xf32> to vector<8xf32>
    %57 = vector.shape_cast %56 : vector<8xf32> to vector<8x1xf32>
    %58 = arith.maximumf %55, %57 : vector<8x1xf32>
    %59 = arith.subf %55, %58 : vector<8x1xf32>
    %60 = math.exp %59 : vector<8x1xf32>
    %61 = vector.broadcast %58 : vector<8x1xf32> to vector<8x8xf32>
    %62 = arith.subf %53, %61 : vector<8x8xf32>
    %63 = math.exp %62 : vector<8x8xf32>
    %c1_38 = arith.constant 1 : index
    %c0_39 = arith.constant 0 : index
    %c0_40 = arith.constant 0 : index
    %64 = vector.load %arg9[%c1_38, %c0_39, %c0_40] : memref<8x8x1xf32, #tpu.memory_space<vmem>>, vector<1x8x1xf32>
    %65 = vector.shape_cast %64 : vector<1x8x1xf32> to vector<8x1xf32>
    %66 = arith.mulf %60, %65 : vector<8x1xf32>
    %cst_41 = arith.constant dense<0.000000e+00> : vector<8xf32>
    %67 = vector.multi_reduction <add>, %63, %cst_41 [1] : vector<8x8xf32> to vector<8xf32>
    %68 = vector.shape_cast %67 : vector<8xf32> to vector<8x1xf32>
    %69 = arith.addf %66, %68 : vector<8x1xf32>
    %c1_42 = arith.constant 1 : index
    %c0_43 = arith.constant 0 : index
    %c0_44 = arith.constant 0 : index
    %70 = vector.load %arg9[%c1_42, %c0_43, %c0_44] : memref<8x8x1xf32, #tpu.memory_space<vmem>>, vector<1x8x1xf32>
    %71 = vector.shape_cast %70 : vector<1x8x1xf32> to vector<8x1xf32>
    %72 = vector.shape_cast %69 : vector<8x1xf32> to vector<1x8x1xf32>
    tpu.vector_store %arg9[%c1_42, %c0_43, %c0_44], %72 {strides = array<i32>} : memref<8x8x1xf32, #tpu.memory_space<vmem>>, vector<1x8x1xf32>,
    %c1_45 = arith.constant 1 : index
    %c0_46 = arith.constant 0 : index
    %c0_47 = arith.constant 0 : index
    %73 = vector.load %arg10[%c1_45, %c0_46, %c0_47] : memref<8x8x16xf32, #tpu.memory_space<vmem>>, vector<1x8x16xf32>
    %74 = vector.shape_cast %73 : vector<1x8x16xf32> to vector<8x16xf32>
    %75 = vector.broadcast %60 : vector<8x1xf32> to vector<8x16xf32>
    %76 = arith.mulf %75, %74 : vector<8x16xf32>
    %cst_48 = arith.constant dense<0.000000e+00> : vector<8x16xf32>
    %77 = tpu.matmul %63, %51, %cst_48 {dimension_numbers = #tpu.dot_dimension_numbers<[1], [0], [0], [1], [0, 0, 1, 1], [], []>} : vector<8x8xf32>, vector<8x16xf32>, vector<8x16xf32> -> vector<8x16xf32>
    %78 = arith.addf %76, %77 : vector<8x16xf32>
    %c1_49 = arith.constant 1 : index
    %c0_50 = arith.constant 0 : index
    %c0_51 = arith.constant 0 : index
    %79 = vector.load %arg10[%c1_49, %c0_50, %c0_51] : memref<8x8x16xf32, #tpu.memory_space<vmem>>, vector<1x8x16xf32>
    %80 = vector.shape_cast %79 : vector<1x8x16xf32> to vector<8x16xf32>
    %81 = vector.shape_cast %78 : vector<8x16xf32> to vector<1x8x16xf32>
    tpu.vector_store %arg10[%c1_49, %c0_50, %c0_51], %81 {strides = array<i32>} : memref<8x8x16xf32, #tpu.memory_space<vmem>>, vector<1x8x16xf32>,
    %c1_52 = arith.constant 1 : index
    %c0_53 = arith.constant 0 : index
    %c0_54 = arith.constant 0 : index
    %82 = vector.load %arg8[%c1_52, %c0_53, %c0_54] : memref<8x8x1xf32, #tpu.memory_space<vmem>>, vector<1x8x1xf32>
    %83 = vector.shape_cast %82 : vector<1x8x1xf32> to vector<8x1xf32>
    %84 = vector.shape_cast %58 : vector<8x1xf32> to vector<1x8x1xf32>
    tpu.vector_store %arg8[%c1_52, %c0_53, %c0_54], %84 {strides = array<i32>} : memref<8x8x1xf32, #tpu.memory_space<vmem>>, vector<1x8x1xf32>,
    %85 = vector.extract_strided_slice %6 {offsets = [0, 32], sizes = [8, 16], strides = [1, 1]} : vector<8x128xf32> to vector<8x16xf32>
    %86 = vector.extract_strided_slice %8 {offsets = [0, 32], sizes = [8, 16], strides = [1, 1]} : vector<8x128xf32> to vector<8x16xf32>
    %87 = vector.extract_strided_slice %10 {offsets = [0, 32], sizes = [8, 16], strides = [1, 1]} : vector<8x128xf32> to vector<8x16xf32>
    %cst_55 = arith.constant dense<0.000000e+00> : vector<8x8xf32>
    %88 = tpu.matmul %85, %86, %cst_55 {dimension_numbers = #tpu.dot_dimension_numbers<[1], [1], [0], [0], [0, 0, 1, 0], [], []>} : vector<8x16xf32>, vector<8x16xf32>, vector<8x8xf32> -> vector<8x8xf32>
    %89 = arith.addf %88, %12 : vector<8x8xf32>
    %c2 = arith.constant 2 : index
    %c0_56 = arith.constant 0 : index
    %c0_57 = arith.constant 0 : index
    %90 = vector.load %arg8[%c2, %c0_56, %c0_57] : memref<8x8x1xf32, #tpu.memory_space<vmem>>, vector<1x8x1xf32>
    %91 = vector.shape_cast %90 : vector<1x8x1xf32> to vector<8x1xf32>
    %cst_58 = arith.constant dense<0xFF800000> : vector<8xf32>
    %92 = vector.multi_reduction <maximumf>, %89, %cst_58 [1] : vector<8x8xf32> to vector<8xf32>
    %93 = vector.shape_cast %92 : vector<8xf32> to vector<8x1xf32>
    %94 = arith.maximumf %91, %93 : vector<8x1xf32>
    %95 = arith.subf %91, %94 : vector<8x1xf32>
    %96 = math.exp %95 : vector<8x1xf32>
    %97 = vector.broadcast %94 : vector<8x1xf32> to vector<8x8xf32>
    %98 = arith.subf %89, %97 : vector<8x8xf32>
    %99 = math.exp %98 : vector<8x8xf32>
    %c2_59 = arith.constant 2 : index
    %c0_60 = arith.constant 0 : index
    %c0_61 = arith.constant 0 : index
    %100 = vector.load %arg9[%c2_59, %c0_60, %c0_61] : memref<8x8x1xf32, #tpu.memory_space<vmem>>, vector<1x8x1xf32>
    %101 = vector.shape_cast %100 : vector<1x8x1xf32> to vector<8x1xf32>
    %102 = arith.mulf %96, %101 : vector<8x1xf32>
    %cst_62 = arith.constant dense<0.000000e+00> : vector<8xf32>
    %103 = vector.multi_reduction <add>, %99, %cst_62 [1] : vector<8x8xf32> to vector<8xf32>
    %104 = vector.shape_cast %103 : vector<8xf32> to vector<8x1xf32>
    %105 = arith.addf %102, %104 : vector<8x1xf32>
    %c2_63 = arith.constant 2 : index
    %c0_64 = arith.constant 0 : index
    %c0_65 = arith.constant 0 : index
    %106 = vector.load %arg9[%c2_63, %c0_64, %c0_65] : memref<8x8x1xf32, #tpu.memory_space<vmem>>, vector<1x8x1xf32>
    %107 = vector.shape_cast %106 : vector<1x8x1xf32> to vector<8x1xf32>
    %108 = vector.shape_cast %105 : vector<8x1xf32> to vector<1x8x1xf32>
    tpu.vector_store %arg9[%c2_63, %c0_64, %c0_65], %108 {strides = array<i32>} : memref<8x8x1xf32, #tpu.memory_space<vmem>>, vector<1x8x1xf32>,
    %c2_66 = arith.constant 2 : index
    %c0_67 = arith.constant 0 : index
    %c0_68 = arith.constant 0 : index
    %109 = vector.load %arg10[%c2_66, %c0_67, %c0_68] : memref<8x8x16xf32, #tpu.memory_space<vmem>>, vector<1x8x16xf32>
    %110 = vector.shape_cast %109 : vector<1x8x16xf32> to vector<8x16xf32>
    %111 = vector.broadcast %96 : vector<8x1xf32> to vector<8x16xf32>
    %112 = arith.mulf %111, %110 : vector<8x16xf32>
    %cst_69 = arith.constant dense<0.000000e+00> : vector<8x16xf32>
    %113 = tpu.matmul %99, %87, %cst_69 {dimension_numbers = #tpu.dot_dimension_numbers<[1], [0], [0], [1], [0, 0, 1, 1], [], []>} : vector<8x8xf32>, vector<8x16xf32>, vector<8x16xf32> -> vector<8x16xf32>
    %114 = arith.addf %112, %113 : vector<8x16xf32>
    %c2_70 = arith.constant 2 : index
    %c0_71 = arith.constant 0 : index
    %c0_72 = arith.constant 0 : index
    %115 = vector.load %arg10[%c2_70, %c0_71, %c0_72] : memref<8x8x16xf32, #tpu.memory_space<vmem>>, vector<1x8x16xf32>
    %116 = vector.shape_cast %115 : vector<1x8x16xf32> to vector<8x16xf32>
    %117 = vector.shape_cast %114 : vector<8x16xf32> to vector<1x8x16xf32>
    tpu.vector_store %arg10[%c2_70, %c0_71, %c0_72], %117 {strides = array<i32>} : memref<8x8x16xf32, #tpu.memory_space<vmem>>, vector<1x8x16xf32>,
    %c2_73 = arith.constant 2 : index
    %c0_74 = arith.constant 0 : index
    %c0_75 = arith.constant 0 : index
    %118 = vector.load %arg8[%c2_73, %c0_74, %c0_75] : memref<8x8x1xf32, #tpu.memory_space<vmem>>, vector<1x8x1xf32>
    %119 = vector.shape_cast %118 : vector<1x8x1xf32> to vector<8x1xf32>
    %120 = vector.shape_cast %94 : vector<8x1xf32> to vector<1x8x1xf32>
    tpu.vector_store %arg8[%c2_73, %c0_74, %c0_75], %120 {strides = array<i32>} : memref<8x8x1xf32, #tpu.memory_space<vmem>>, vector<1x8x1xf32>,
    %121 = vector.extract_strided_slice %6 {offsets = [0, 48], sizes = [8, 16], strides = [1, 1]} : vector<8x128xf32> to vector<8x16xf32>
    %122 = vector.extract_strided_slice %8 {offsets = [0, 48], sizes = [8, 16], strides = [1, 1]} : vector<8x128xf32> to vector<8x16xf32>
    %123 = vector.extract_strided_slice %10 {offsets = [0, 48], sizes = [8, 16], strides = [1, 1]} : vector<8x128xf32> to vector<8x16xf32>
    %cst_76 = arith.constant dense<0.000000e+00> : vector<8x8xf32>
    %124 = tpu.matmul %121, %122, %cst_76 {dimension_numbers = #tpu.dot_dimension_numbers<[1], [1], [0], [0], [0, 0, 1, 0], [], []>} : vector<8x16xf32>, vector<8x16xf32>, vector<8x8xf32> -> vector<8x8xf32>
    %125 = arith.addf %124, %12 : vector<8x8xf32>
    %c3 = arith.constant 3 : index
    %c0_77 = arith.constant 0 : index
    %c0_78 = arith.constant 0 : index
    %126 = vector.load %arg8[%c3, %c0_77, %c0_78] : memref<8x8x1xf32, #tpu.memory_space<vmem>>, vector<1x8x1xf32>
    %127 = vector.shape_cast %126 : vector<1x8x1xf32> to vector<8x1xf32>
    %cst_79 = arith.constant dense<0xFF800000> : vector<8xf32>
    %128 = vector.multi_reduction <maximumf>, %125, %cst_79 [1] : vector<8x8xf32> to vector<8xf32>
    %129 = vector.shape_cast %128 : vector<8xf32> to vector<8x1xf32>
    %130 = arith.maximumf %127, %129 : vector<8x1xf32>
    %131 = arith.subf %127, %130 : vector<8x1xf32>
    %132 = math.exp %131 : vector<8x1xf32>
    %133 = vector.broadcast %130 : vector<8x1xf32> to vector<8x8xf32>
    %134 = arith.subf %125, %133 : vector<8x8xf32>
    %135 = math.exp %134 : vector<8x8xf32>
    %c3_80 = arith.constant 3 : index
    %c0_81 = arith.constant 0 : index
    %c0_82 = arith.constant 0 : index
    %136 = vector.load %arg9[%c3_80, %c0_81, %c0_82] : memref<8x8x1xf32, #tpu.memory_space<vmem>>, vector<1x8x1xf32>
    %137 = vector.shape_cast %136 : vector<1x8x1xf32> to vector<8x1xf32>
    %138 = arith.mulf %132, %137 : vector<8x1xf32>
    %cst_83 = arith.constant dense<0.000000e+00> : vector<8xf32>
    %139 = vector.multi_reduction <add>, %135, %cst_83 [1] : vector<8x8xf32> to vector<8xf32>
    %140 = vector.shape_cast %139 : vector<8xf32> to vector<8x1xf32>
    %141 = arith.addf %138, %140 : vector<8x1xf32>
    %c3_84 = arith.constant 3 : index
    %c0_85 = arith.constant 0 : index
    %c0_86 = arith.constant 0 : index
    %142 = vector.load %arg9[%c3_84, %c0_85, %c0_86] : memref<8x8x1xf32, #tpu.memory_space<vmem>>, vector<1x8x1xf32>
    %143 = vector.shape_cast %142 : vector<1x8x1xf32> to vector<8x1xf32>
    %144 = vector.shape_cast %141 : vector<8x1xf32> to vector<1x8x1xf32>
    tpu.vector_store %arg9[%c3_84, %c0_85, %c0_86], %144 {strides = array<i32>} : memref<8x8x1xf32, #tpu.memory_space<vmem>>, vector<1x8x1xf32>,
    %c3_87 = arith.constant 3 : index
    %c0_88 = arith.constant 0 : index
    %c0_89 = arith.constant 0 : index
    %145 = vector.load %arg10[%c3_87, %c0_88, %c0_89] : memref<8x8x16xf32, #tpu.memory_space<vmem>>, vector<1x8x16xf32>
    %146 = vector.shape_cast %145 : vector<1x8x16xf32> to vector<8x16xf32>
    %147 = vector.broadcast %132 : vector<8x1xf32> to vector<8x16xf32>
    %148 = arith.mulf %147, %146 : vector<8x16xf32>
    %cst_90 = arith.constant dense<0.000000e+00> : vector<8x16xf32>
    %149 = tpu.matmul %135, %123, %cst_90 {dimension_numbers = #tpu.dot_dimension_numbers<[1], [0], [0], [1], [0, 0, 1, 1], [], []>} : vector<8x8xf32>, vector<8x16xf32>, vector<8x16xf32> -> vector<8x16xf32>
    %150 = arith.addf %148, %149 : vector<8x16xf32>
    %c3_91 = arith.constant 3 : index
    %c0_92 = arith.constant 0 : index
    %c0_93 = arith.constant 0 : index
    %151 = vector.load %arg10[%c3_91, %c0_92, %c0_93] : memref<8x8x16xf32, #tpu.memory_space<vmem>>, vector<1x8x16xf32>
    %152 = vector.shape_cast %151 : vector<1x8x16xf32> to vector<8x16xf32>
    %153 = vector.shape_cast %150 : vector<8x16xf32> to vector<1x8x16xf32>
    tpu.vector_store %arg10[%c3_91, %c0_92, %c0_93], %153 {strides = array<i32>} : memref<8x8x16xf32, #tpu.memory_space<vmem>>, vector<1x8x16xf32>,
    %c3_94 = arith.constant 3 : index
    %c0_95 = arith.constant 0 : index
    %c0_96 = arith.constant 0 : index
    %154 = vector.load %arg8[%c3_94, %c0_95, %c0_96] : memref<8x8x1xf32, #tpu.memory_space<vmem>>, vector<1x8x1xf32>
    %155 = vector.shape_cast %154 : vector<1x8x1xf32> to vector<8x1xf32>
    %156 = vector.shape_cast %130 : vector<8x1xf32> to vector<1x8x1xf32>
    tpu.vector_store %arg8[%c3_94, %c0_95, %c0_96], %156 {strides = array<i32>} : memref<8x8x1xf32, #tpu.memory_space<vmem>>, vector<1x8x1xf32>,
    %157 = vector.extract_strided_slice %6 {offsets = [0, 64], sizes = [8, 16], strides = [1, 1]} : vector<8x128xf32> to vector<8x16xf32>
    %158 = vector.extract_strided_slice %8 {offsets = [0, 64], sizes = [8, 16], strides = [1, 1]} : vector<8x128xf32> to vector<8x16xf32>
    %159 = vector.extract_strided_slice %10 {offsets = [0, 64], sizes = [8, 16], strides = [1, 1]} : vector<8x128xf32> to vector<8x16xf32>
    %cst_97 = arith.constant dense<0.000000e+00> : vector<8x8xf32>
    %160 = tpu.matmul %157, %158, %cst_97 {dimension_numbers = #tpu.dot_dimension_numbers<[1], [1], [0], [0], [0, 0, 1, 0], [], []>} : vector<8x16xf32>, vector<8x16xf32>, vector<8x8xf32> -> vector<8x8xf32>
    %161 = arith.addf %160, %12 : vector<8x8xf32>
    %c4 = arith.constant 4 : index
    %c0_98 = arith.constant 0 : index
    %c0_99 = arith.constant 0 : index
    %162 = vector.load %arg8[%c4, %c0_98, %c0_99] : memref<8x8x1xf32, #tpu.memory_space<vmem>>, vector<1x8x1xf32>
    %163 = vector.shape_cast %162 : vector<1x8x1xf32> to vector<8x1xf32>
    %cst_100 = arith.constant dense<0xFF800000> : vector<8xf32>
    %164 = vector.multi_reduction <maximumf>, %161, %cst_100 [1] : vector<8x8xf32> to vector<8xf32>
    %165 = vector.shape_cast %164 : vector<8xf32> to vector<8x1xf32>
    %166 = arith.maximumf %163, %165 : vector<8x1xf32>
    %167 = arith.subf %163, %166 : vector<8x1xf32>
    %168 = math.exp %167 : vector<8x1xf32>
    %169 = vector.broadcast %166 : vector<8x1xf32> to vector<8x8xf32>
    %170 = arith.subf %161, %169 : vector<8x8xf32>
    %171 = math.exp %170 : vector<8x8xf32>
    %c4_101 = arith.constant 4 : index
    %c0_102 = arith.constant 0 : index
    %c0_103 = arith.constant 0 : index
    %172 = vector.load %arg9[%c4_101, %c0_102, %c0_103] : memref<8x8x1xf32, #tpu.memory_space<vmem>>, vector<1x8x1xf32>
    %173 = vector.shape_cast %172 : vector<1x8x1xf32> to vector<8x1xf32>
    %174 = arith.mulf %168, %173 : vector<8x1xf32>
    %cst_104 = arith.constant dense<0.000000e+00> : vector<8xf32>
    %175 = vector.multi_reduction <add>, %171, %cst_104 [1] : vector<8x8xf32> to vector<8xf32>
    %176 = vector.shape_cast %175 : vector<8xf32> to vector<8x1xf32>
    %177 = arith.addf %174, %176 : vector<8x1xf32>
    %c4_105 = arith.constant 4 : index
    %c0_106 = arith.constant 0 : index
    %c0_107 = arith.constant 0 : index
    %178 = vector.load %arg9[%c4_105, %c0_106, %c0_107] : memref<8x8x1xf32, #tpu.memory_space<vmem>>, vector<1x8x1xf32>
    %179 = vector.shape_cast %178 : vector<1x8x1xf32> to vector<8x1xf32>
    %180 = vector.shape_cast %177 : vector<8x1xf32> to vector<1x8x1xf32>
    tpu.vector_store %arg9[%c4_105, %c0_106, %c0_107], %180 {strides = array<i32>} : memref<8x8x1xf32, #tpu.memory_space<vmem>>, vector<1x8x1xf32>,
    %c4_108 = arith.constant 4 : index
    %c0_109 = arith.constant 0 : index
    %c0_110 = arith.constant 0 : index
    %181 = vector.load %arg10[%c4_108, %c0_109, %c0_110] : memref<8x8x16xf32, #tpu.memory_space<vmem>>, vector<1x8x16xf32>
    %182 = vector.shape_cast %181 : vector<1x8x16xf32> to vector<8x16xf32>
    %183 = vector.broadcast %168 : vector<8x1xf32> to vector<8x16xf32>
    %184 = arith.mulf %183, %182 : vector<8x16xf32>
    %cst_111 = arith.constant dense<0.000000e+00> : vector<8x16xf32>
    %185 = tpu.matmul %171, %159, %cst_111 {dimension_numbers = #tpu.dot_dimension_numbers<[1], [0], [0], [1], [0, 0, 1, 1], [], []>} : vector<8x8xf32>, vector<8x16xf32>, vector<8x16xf32> -> vector<8x16xf32>
    %186 = arith.addf %184, %185 : vector<8x16xf32>
    %c4_112 = arith.constant 4 : index
    %c0_113 = arith.constant 0 : index
    %c0_114 = arith.constant 0 : index
    %187 = vector.load %arg10[%c4_112, %c0_113, %c0_114] : memref<8x8x16xf32, #tpu.memory_space<vmem>>, vector<1x8x16xf32>
    %188 = vector.shape_cast %187 : vector<1x8x16xf32> to vector<8x16xf32>
    %189 = vector.shape_cast %186 : vector<8x16xf32> to vector<1x8x16xf32>
    tpu.vector_store %arg10[%c4_112, %c0_113, %c0_114], %189 {strides = array<i32>} : memref<8x8x16xf32, #tpu.memory_space<vmem>>, vector<1x8x16xf32>,
    %c4_115 = arith.constant 4 : index
    %c0_116 = arith.constant 0 : index
    %c0_117 = arith.constant 0 : index
    %190 = vector.load %arg8[%c4_115, %c0_116, %c0_117] : memref<8x8x1xf32, #tpu.memory_space<vmem>>, vector<1x8x1xf32>
    %191 = vector.shape_cast %190 : vector<1x8x1xf32> to vector<8x1xf32>
    %192 = vector.shape_cast %166 : vector<8x1xf32> to vector<1x8x1xf32>
    tpu.vector_store %arg8[%c4_115, %c0_116, %c0_117], %192 {strides = array<i32>} : memref<8x8x1xf32, #tpu.memory_space<vmem>>, vector<1x8x1xf32>,
    %193 = vector.extract_strided_slice %6 {offsets = [0, 80], sizes = [8, 16], strides = [1, 1]} : vector<8x128xf32> to vector<8x16xf32>
    %194 = vector.extract_strided_slice %8 {offsets = [0, 80], sizes = [8, 16], strides = [1, 1]} : vector<8x128xf32> to vector<8x16xf32>
    %195 = vector.extract_strided_slice %10 {offsets = [0, 80], sizes = [8, 16], strides = [1, 1]} : vector<8x128xf32> to vector<8x16xf32>
    %cst_118 = arith.constant dense<0.000000e+00> : vector<8x8xf32>
    %196 = tpu.matmul %193, %194, %cst_118 {dimension_numbers = #tpu.dot_dimension_numbers<[1], [1], [0], [0], [0, 0, 1, 0], [], []>} : vector<8x16xf32>, vector<8x16xf32>, vector<8x8xf32> -> vector<8x8xf32>
    %197 = arith.addf %196, %12 : vector<8x8xf32>
    %c5 = arith.constant 5 : index
    %c0_119 = arith.constant 0 : index
    %c0_120 = arith.constant 0 : index
    %198 = vector.load %arg8[%c5, %c0_119, %c0_120] : memref<8x8x1xf32, #tpu.memory_space<vmem>>, vector<1x8x1xf32>
    %199 = vector.shape_cast %198 : vector<1x8x1xf32> to vector<8x1xf32>
    %cst_121 = arith.constant dense<0xFF800000> : vector<8xf32>
    %200 = vector.multi_reduction <maximumf>, %197, %cst_121 [1] : vector<8x8xf32> to vector<8xf32>
    %201 = vector.shape_cast %200 : vector<8xf32> to vector<8x1xf32>
    %202 = arith.maximumf %199, %201 : vector<8x1xf32>
    %203 = arith.subf %199, %202 : vector<8x1xf32>
    %204 = math.exp %203 : vector<8x1xf32>
    %205 = vector.broadcast %202 : vector<8x1xf32> to vector<8x8xf32>
    %206 = arith.subf %197, %205 : vector<8x8xf32>
    %207 = math.exp %206 : vector<8x8xf32>
    %c5_122 = arith.constant 5 : index
    %c0_123 = arith.constant 0 : index
    %c0_124 = arith.constant 0 : index
    %208 = vector.load %arg9[%c5_122, %c0_123, %c0_124] : memref<8x8x1xf32, #tpu.memory_space<vmem>>, vector<1x8x1xf32>
    %209 = vector.shape_cast %208 : vector<1x8x1xf32> to vector<8x1xf32>
    %210 = arith.mulf %204, %209 : vector<8x1xf32>
    %cst_125 = arith.constant dense<0.000000e+00> : vector<8xf32>
    %211 = vector.multi_reduction <add>, %207, %cst_125 [1] : vector<8x8xf32> to vector<8xf32>
    %212 = vector.shape_cast %211 : vector<8xf32> to vector<8x1xf32>
    %213 = arith.addf %210, %212 : vector<8x1xf32>
    %c5_126 = arith.constant 5 : index
    %c0_127 = arith.constant 0 : index
    %c0_128 = arith.constant 0 : index
    %214 = vector.load %arg9[%c5_126, %c0_127, %c0_128] : memref<8x8x1xf32, #tpu.memory_space<vmem>>, vector<1x8x1xf32>
    %215 = vector.shape_cast %214 : vector<1x8x1xf32> to vector<8x1xf32>
    %216 = vector.shape_cast %213 : vector<8x1xf32> to vector<1x8x1xf32>
    tpu.vector_store %arg9[%c5_126, %c0_127, %c0_128], %216 {strides = array<i32>} : memref<8x8x1xf32, #tpu.memory_space<vmem>>, vector<1x8x1xf32>,
    %c5_129 = arith.constant 5 : index
    %c0_130 = arith.constant 0 : index
    %c0_131 = arith.constant 0 : index
    %217 = vector.load %arg10[%c5_129, %c0_130, %c0_131] : memref<8x8x16xf32, #tpu.memory_space<vmem>>, vector<1x8x16xf32>
    %218 = vector.shape_cast %217 : vector<1x8x16xf32> to vector<8x16xf32>
    %219 = vector.broadcast %204 : vector<8x1xf32> to vector<8x16xf32>
    %220 = arith.mulf %219, %218 : vector<8x16xf32>
    %cst_132 = arith.constant dense<0.000000e+00> : vector<8x16xf32>
    %221 = tpu.matmul %207, %195, %cst_132 {dimension_numbers = #tpu.dot_dimension_numbers<[1], [0], [0], [1], [0, 0, 1, 1], [], []>} : vector<8x8xf32>, vector<8x16xf32>, vector<8x16xf32> -> vector<8x16xf32>
    %222 = arith.addf %220, %221 : vector<8x16xf32>
    %c5_133 = arith.constant 5 : index
    %c0_134 = arith.constant 0 : index
    %c0_135 = arith.constant 0 : index
    %223 = vector.load %arg10[%c5_133, %c0_134, %c0_135] : memref<8x8x16xf32, #tpu.memory_space<vmem>>, vector<1x8x16xf32>
    %224 = vector.shape_cast %223 : vector<1x8x16xf32> to vector<8x16xf32>
    %225 = vector.shape_cast %222 : vector<8x16xf32> to vector<1x8x16xf32>
    tpu.vector_store %arg10[%c5_133, %c0_134, %c0_135], %225 {strides = array<i32>} : memref<8x8x16xf32, #tpu.memory_space<vmem>>, vector<1x8x16xf32>,
    %c5_136 = arith.constant 5 : index
    %c0_137 = arith.constant 0 : index
    %c0_138 = arith.constant 0 : index
    %226 = vector.load %arg8[%c5_136, %c0_137, %c0_138] : memref<8x8x1xf32, #tpu.memory_space<vmem>>, vector<1x8x1xf32>
    %227 = vector.shape_cast %226 : vector<1x8x1xf32> to vector<8x1xf32>
    %228 = vector.shape_cast %202 : vector<8x1xf32> to vector<1x8x1xf32>
    tpu.vector_store %arg8[%c5_136, %c0_137, %c0_138], %228 {strides = array<i32>} : memref<8x8x1xf32, #tpu.memory_space<vmem>>, vector<1x8x1xf32>,
    %229 = vector.extract_strided_slice %6 {offsets = [0, 96], sizes = [8, 16], strides = [1, 1]} : vector<8x128xf32> to vector<8x16xf32>
    %230 = vector.extract_strided_slice %8 {offsets = [0, 96], sizes = [8, 16], strides = [1, 1]} : vector<8x128xf32> to vector<8x16xf32>
    %231 = vector.extract_strided_slice %10 {offsets = [0, 96], sizes = [8, 16], strides = [1, 1]} : vector<8x128xf32> to vector<8x16xf32>
    %cst_139 = arith.constant dense<0.000000e+00> : vector<8x8xf32>
    %232 = tpu.matmul %229, %230, %cst_139 {dimension_numbers = #tpu.dot_dimension_numbers<[1], [1], [0], [0], [0, 0, 1, 0], [], []>} : vector<8x16xf32>, vector<8x16xf32>, vector<8x8xf32> -> vector<8x8xf32>
    %233 = arith.addf %232, %12 : vector<8x8xf32>
    %c6 = arith.constant 6 : index
    %c0_140 = arith.constant 0 : index
    %c0_141 = arith.constant 0 : index
    %234 = vector.load %arg8[%c6, %c0_140, %c0_141] : memref<8x8x1xf32, #tpu.memory_space<vmem>>, vector<1x8x1xf32>
    %235 = vector.shape_cast %234 : vector<1x8x1xf32> to vector<8x1xf32>
    %cst_142 = arith.constant dense<0xFF800000> : vector<8xf32>
    %236 = vector.multi_reduction <maximumf>, %233, %cst_142 [1] : vector<8x8xf32> to vector<8xf32>
    %237 = vector.shape_cast %236 : vector<8xf32> to vector<8x1xf32>
    %238 = arith.maximumf %235, %237 : vector<8x1xf32>
    %239 = arith.subf %235, %238 : vector<8x1xf32>
    %240 = math.exp %239 : vector<8x1xf32>
    %241 = vector.broadcast %238 : vector<8x1xf32> to vector<8x8xf32>
    %242 = arith.subf %233, %241 : vector<8x8xf32>
    %243 = math.exp %242 : vector<8x8xf32>
    %c6_143 = arith.constant 6 : index
    %c0_144 = arith.constant 0 : index
    %c0_145 = arith.constant 0 : index
    %244 = vector.load %arg9[%c6_143, %c0_144, %c0_145] : memref<8x8x1xf32, #tpu.memory_space<vmem>>, vector<1x8x1xf32>
    %245 = vector.shape_cast %244 : vector<1x8x1xf32> to vector<8x1xf32>
    %246 = arith.mulf %240, %245 : vector<8x1xf32>
    %cst_146 = arith.constant dense<0.000000e+00> : vector<8xf32>
    %247 = vector.multi_reduction <add>, %243, %cst_146 [1] : vector<8x8xf32> to vector<8xf32>
    %248 = vector.shape_cast %247 : vector<8xf32> to vector<8x1xf32>
    %249 = arith.addf %246, %248 : vector<8x1xf32>
    %c6_147 = arith.constant 6 : index
    %c0_148 = arith.constant 0 : index
    %c0_149 = arith.constant 0 : index
    %250 = vector.load %arg9[%c6_147, %c0_148, %c0_149] : memref<8x8x1xf32, #tpu.memory_space<vmem>>, vector<1x8x1xf32>
    %251 = vector.shape_cast %250 : vector<1x8x1xf32> to vector<8x1xf32>
    %252 = vector.shape_cast %249 : vector<8x1xf32> to vector<1x8x1xf32>
    tpu.vector_store %arg9[%c6_147, %c0_148, %c0_149], %252 {strides = array<i32>} : memref<8x8x1xf32, #tpu.memory_space<vmem>>, vector<1x8x1xf32>,
    %c6_150 = arith.constant 6 : index
    %c0_151 = arith.constant 0 : index
    %c0_152 = arith.constant 0 : index
    %253 = vector.load %arg10[%c6_150, %c0_151, %c0_152] : memref<8x8x16xf32, #tpu.memory_space<vmem>>, vector<1x8x16xf32>
    %254 = vector.shape_cast %253 : vector<1x8x16xf32> to vector<8x16xf32>
    %255 = vector.broadcast %240 : vector<8x1xf32> to vector<8x16xf32>
    %256 = arith.mulf %255, %254 : vector<8x16xf32>
    %cst_153 = arith.constant dense<0.000000e+00> : vector<8x16xf32>
    %257 = tpu.matmul %243, %231, %cst_153 {dimension_numbers = #tpu.dot_dimension_numbers<[1], [0], [0], [1], [0, 0, 1, 1], [], []>} : vector<8x8xf32>, vector<8x16xf32>, vector<8x16xf32> -> vector<8x16xf32>
    %258 = arith.addf %256, %257 : vector<8x16xf32>
    %c6_154 = arith.constant 6 : index
    %c0_155 = arith.constant 0 : index
    %c0_156 = arith.constant 0 : index
    %259 = vector.load %arg10[%c6_154, %c0_155, %c0_156] : memref<8x8x16xf32, #tpu.memory_space<vmem>>, vector<1x8x16xf32>
    %260 = vector.shape_cast %259 : vector<1x8x16xf32> to vector<8x16xf32>
    %261 = vector.shape_cast %258 : vector<8x16xf32> to vector<1x8x16xf32>
    tpu.vector_store %arg10[%c6_154, %c0_155, %c0_156], %261 {strides = array<i32>} : memref<8x8x16xf32, #tpu.memory_space<vmem>>, vector<1x8x16xf32>,
    %c6_157 = arith.constant 6 : index
    %c0_158 = arith.constant 0 : index
    %c0_159 = arith.constant 0 : index
    %262 = vector.load %arg8[%c6_157, %c0_158, %c0_159] : memref<8x8x1xf32, #tpu.memory_space<vmem>>, vector<1x8x1xf32>
    %263 = vector.shape_cast %262 : vector<1x8x1xf32> to vector<8x1xf32>
    %264 = vector.shape_cast %238 : vector<8x1xf32> to vector<1x8x1xf32>
    tpu.vector_store %arg8[%c6_157, %c0_158, %c0_159], %264 {strides = array<i32>} : memref<8x8x1xf32, #tpu.memory_space<vmem>>, vector<1x8x1xf32>,
    %265 = vector.extract_strided_slice %6 {offsets = [0, 112], sizes = [8, 16], strides = [1, 1]} : vector<8x128xf32> to vector<8x16xf32>
    %266 = vector.extract_strided_slice %8 {offsets = [0, 112], sizes = [8, 16], strides = [1, 1]} : vector<8x128xf32> to vector<8x16xf32>
    %267 = vector.extract_strided_slice %10 {offsets = [0, 112], sizes = [8, 16], strides = [1, 1]} : vector<8x128xf32> to vector<8x16xf32>
    %cst_160 = arith.constant dense<0.000000e+00> : vector<8x8xf32>
    %268 = tpu.matmul %265, %266, %cst_160 {dimension_numbers = #tpu.dot_dimension_numbers<[1], [1], [0], [0], [0, 0, 1, 0], [], []>} : vector<8x16xf32>, vector<8x16xf32>, vector<8x8xf32> -> vector<8x8xf32>
    %269 = arith.addf %268, %12 : vector<8x8xf32>
    %c7 = arith.constant 7 : index
    %c0_161 = arith.constant 0 : index
    %c0_162 = arith.constant 0 : index
    %270 = vector.load %arg8[%c7, %c0_161, %c0_162] : memref<8x8x1xf32, #tpu.memory_space<vmem>>, vector<1x8x1xf32>
    %271 = vector.shape_cast %270 : vector<1x8x1xf32> to vector<8x1xf32>
    %cst_163 = arith.constant dense<0xFF800000> : vector<8xf32>
    %272 = vector.multi_reduction <maximumf>, %269, %cst_163 [1] : vector<8x8xf32> to vector<8xf32>
    %273 = vector.shape_cast %272 : vector<8xf32> to vector<8x1xf32>
    %274 = arith.maximumf %271, %273 : vector<8x1xf32>
    %275 = arith.subf %271, %274 : vector<8x1xf32>
    %276 = math.exp %275 : vector<8x1xf32>
    %277 = vector.broadcast %274 : vector<8x1xf32> to vector<8x8xf32>
    %278 = arith.subf %269, %277 : vector<8x8xf32>
    %279 = math.exp %278 : vector<8x8xf32>
    %c7_164 = arith.constant 7 : index
    %c0_165 = arith.constant 0 : index
    %c0_166 = arith.constant 0 : index
    %280 = vector.load %arg9[%c7_164, %c0_165, %c0_166] : memref<8x8x1xf32, #tpu.memory_space<vmem>>, vector<1x8x1xf32>
    %281 = vector.shape_cast %280 : vector<1x8x1xf32> to vector<8x1xf32>
    %282 = arith.mulf %276, %281 : vector<8x1xf32>
    %cst_167 = arith.constant dense<0.000000e+00> : vector<8xf32>
    %283 = vector.multi_reduction <add>, %279, %cst_167 [1] : vector<8x8xf32> to vector<8xf32>
    %284 = vector.shape_cast %283 : vector<8xf32> to vector<8x1xf32>
    %285 = arith.addf %282, %284 : vector<8x1xf32>
    %c7_168 = arith.constant 7 : index
    %c0_169 = arith.constant 0 : index
    %c0_170 = arith.constant 0 : index
    %286 = vector.load %arg9[%c7_168, %c0_169, %c0_170] : memref<8x8x1xf32, #tpu.memory_space<vmem>>, vector<1x8x1xf32>
    %287 = vector.shape_cast %286 : vector<1x8x1xf32> to vector<8x1xf32>
    %288 = vector.shape_cast %285 : vector<8x1xf32> to vector<1x8x1xf32>
    tpu.vector_store %arg9[%c7_168, %c0_169, %c0_170], %288 {strides = array<i32>} : memref<8x8x1xf32, #tpu.memory_space<vmem>>, vector<1x8x1xf32>,
    %c7_171 = arith.constant 7 : index
    %c0_172 = arith.constant 0 : index
    %c0_173 = arith.constant 0 : index
    %289 = vector.load %arg10[%c7_171, %c0_172, %c0_173] : memref<8x8x16xf32, #tpu.memory_space<vmem>>, vector<1x8x16xf32>
    %290 = vector.shape_cast %289 : vector<1x8x16xf32> to vector<8x16xf32>
    %291 = vector.broadcast %276 : vector<8x1xf32> to vector<8x16xf32>
    %292 = arith.mulf %291, %290 : vector<8x16xf32>
    %cst_174 = arith.constant dense<0.000000e+00> : vector<8x16xf32>
    %293 = tpu.matmul %279, %267, %cst_174 {dimension_numbers = #tpu.dot_dimension_numbers<[1], [0], [0], [1], [0, 0, 1, 1], [], []>} : vector<8x8xf32>, vector<8x16xf32>, vector<8x16xf32> -> vector<8x16xf32>
    %294 = arith.addf %292, %293 : vector<8x16xf32>
    %c7_175 = arith.constant 7 : index
    %c0_176 = arith.constant 0 : index
    %c0_177 = arith.constant 0 : index
    %295 = vector.load %arg10[%c7_175, %c0_176, %c0_177] : memref<8x8x16xf32, #tpu.memory_space<vmem>>, vector<1x8x16xf32>
    %296 = vector.shape_cast %295 : vector<1x8x16xf32> to vector<8x16xf32>
    %297 = vector.shape_cast %294 : vector<8x16xf32> to vector<1x8x16xf32>
    tpu.vector_store %arg10[%c7_175, %c0_176, %c0_177], %297 {strides = array<i32>} : memref<8x8x16xf32, #tpu.memory_space<vmem>>, vector<1x8x16xf32>,
    %c7_178 = arith.constant 7 : index
    %c0_179 = arith.constant 0 : index
    %c0_180 = arith.constant 0 : index
    %298 = vector.load %arg8[%c7_178, %c0_179, %c0_180] : memref<8x8x1xf32, #tpu.memory_space<vmem>>, vector<1x8x1xf32>
    %299 = vector.shape_cast %298 : vector<1x8x1xf32> to vector<8x1xf32>
    %300 = vector.shape_cast %274 : vector<8x1xf32> to vector<1x8x1xf32>
    tpu.vector_store %arg8[%c7_178, %c0_179, %c0_180], %300 {strides = array<i32>} : memref<8x8x1xf32, #tpu.memory_space<vmem>>, vector<1x8x1xf32>,
    %c0_i32_181 = arith.constant 0 : i32
    %301 = arith.cmpi eq, %arg2, %c0_i32_181 : i32
    %302 = arith.extui %301 : i1 to i32
    %c0_i32_182 = arith.constant 0 : i32
    %303 = arith.cmpi ne, %302, %c0_i32_182 : i32
    scf.if %303 {
      %c0_183 = arith.constant 0 : index
      %c0_184 = arith.constant 0 : index
      %c0_185 = arith.constant 0 : index
      %304 = vector.load %arg10[%c0_183, %c0_184, %c0_185] : memref<8x8x16xf32, #tpu.memory_space<vmem>>, vector<1x8x16xf32>
      %305 = vector.shape_cast %304 : vector<1x8x16xf32> to vector<8x16xf32>
      %c0_186 = arith.constant 0 : index
      %c0_187 = arith.constant 0 : index
      %c0_188 = arith.constant 0 : index
      %306 = vector.load %arg9[%c0_186, %c0_187, %c0_188] : memref<8x8x1xf32, #tpu.memory_space<vmem>>, vector<1x8x1xf32>
      %307 = vector.shape_cast %306 : vector<1x8x1xf32> to vector<8x1xf32>
      %308 = vector.broadcast %307 : vector<8x1xf32> to vector<8x16xf32>
      %309 = arith.divf %305, %308 : vector<8x16xf32>
      %c1_189 = arith.constant 1 : index
      %c0_190 = arith.constant 0 : index
      %c0_191 = arith.constant 0 : index
      %310 = vector.load %arg10[%c1_189, %c0_190, %c0_191] : memref<8x8x16xf32, #tpu.memory_space<vmem>>, vector<1x8x16xf32>
      %311 = vector.shape_cast %310 : vector<1x8x16xf32> to vector<8x16xf32>
      %c1_192 = arith.constant 1 : index
      %c0_193 = arith.constant 0 : index
      %c0_194 = arith.constant 0 : index
      %312 = vector.load %arg9[%c1_192, %c0_193, %c0_194] : memref<8x8x1xf32, #tpu.memory_space<vmem>>, vector<1x8x1xf32>
      %313 = vector.shape_cast %312 : vector<1x8x1xf32> to vector<8x1xf32>
      %314 = vector.broadcast %313 : vector<8x1xf32> to vector<8x16xf32>
      %315 = arith.divf %311, %314 : vector<8x16xf32>
      %c2_195 = arith.constant 2 : index
      %c0_196 = arith.constant 0 : index
      %c0_197 = arith.constant 0 : index
      %316 = vector.load %arg10[%c2_195, %c0_196, %c0_197] : memref<8x8x16xf32, #tpu.memory_space<vmem>>, vector<1x8x16xf32>
      %317 = vector.shape_cast %316 : vector<1x8x16xf32> to vector<8x16xf32>
      %c2_198 = arith.constant 2 : index
      %c0_199 = arith.constant 0 : index
      %c0_200 = arith.constant 0 : index
      %318 = vector.load %arg9[%c2_198, %c0_199, %c0_200] : memref<8x8x1xf32, #tpu.memory_space<vmem>>, vector<1x8x1xf32>
      %319 = vector.shape_cast %318 : vector<1x8x1xf32> to vector<8x1xf32>
      %320 = vector.broadcast %319 : vector<8x1xf32> to vector<8x16xf32>
      %321 = arith.divf %317, %320 : vector<8x16xf32>
      %c3_201 = arith.constant 3 : index
      %c0_202 = arith.constant 0 : index
      %c0_203 = arith.constant 0 : index
      %322 = vector.load %arg10[%c3_201, %c0_202, %c0_203] : memref<8x8x16xf32, #tpu.memory_space<vmem>>, vector<1x8x16xf32>
      %323 = vector.shape_cast %322 : vector<1x8x16xf32> to vector<8x16xf32>
      %c3_204 = arith.constant 3 : index
      %c0_205 = arith.constant 0 : index
      %c0_206 = arith.constant 0 : index
      %324 = vector.load %arg9[%c3_204, %c0_205, %c0_206] : memref<8x8x1xf32, #tpu.memory_space<vmem>>, vector<1x8x1xf32>
      %325 = vector.shape_cast %324 : vector<1x8x1xf32> to vector<8x1xf32>
      %326 = vector.broadcast %325 : vector<8x1xf32> to vector<8x16xf32>
      %327 = arith.divf %323, %326 : vector<8x16xf32>
      %c4_207 = arith.constant 4 : index
      %c0_208 = arith.constant 0 : index
      %c0_209 = arith.constant 0 : index
      %328 = vector.load %arg10[%c4_207, %c0_208, %c0_209] : memref<8x8x16xf32, #tpu.memory_space<vmem>>, vector<1x8x16xf32>
      %329 = vector.shape_cast %328 : vector<1x8x16xf32> to vector<8x16xf32>
      %c4_210 = arith.constant 4 : index
      %c0_211 = arith.constant 0 : index
      %c0_212 = arith.constant 0 : index
      %330 = vector.load %arg9[%c4_210, %c0_211, %c0_212] : memref<8x8x1xf32, #tpu.memory_space<vmem>>, vector<1x8x1xf32>
      %331 = vector.shape_cast %330 : vector<1x8x1xf32> to vector<8x1xf32>
      %332 = vector.broadcast %331 : vector<8x1xf32> to vector<8x16xf32>
      %333 = arith.divf %329, %332 : vector<8x16xf32>
      %c5_213 = arith.constant 5 : index
      %c0_214 = arith.constant 0 : index
      %c0_215 = arith.constant 0 : index
      %334 = vector.load %arg10[%c5_213, %c0_214, %c0_215] : memref<8x8x16xf32, #tpu.memory_space<vmem>>, vector<1x8x16xf32>
      %335 = vector.shape_cast %334 : vector<1x8x16xf32> to vector<8x16xf32>
      %c5_216 = arith.constant 5 : index
      %c0_217 = arith.constant 0 : index
      %c0_218 = arith.constant 0 : index
      %336 = vector.load %arg9[%c5_216, %c0_217, %c0_218] : memref<8x8x1xf32, #tpu.memory_space<vmem>>, vector<1x8x1xf32>
      %337 = vector.shape_cast %336 : vector<1x8x1xf32> to vector<8x1xf32>
      %338 = vector.broadcast %337 : vector<8x1xf32> to vector<8x16xf32>
      %339 = arith.divf %335, %338 : vector<8x16xf32>
      %c6_219 = arith.constant 6 : index
      %c0_220 = arith.constant 0 : index
      %c0_221 = arith.constant 0 : index
      %340 = vector.load %arg10[%c6_219, %c0_220, %c0_221] : memref<8x8x16xf32, #tpu.memory_space<vmem>>, vector<1x8x16xf32>
      %341 = vector.shape_cast %340 : vector<1x8x16xf32> to vector<8x16xf32>
      %c6_222 = arith.constant 6 : index
      %c0_223 = arith.constant 0 : index
      %c0_224 = arith.constant 0 : index
      %342 = vector.load %arg9[%c6_222, %c0_223, %c0_224] : memref<8x8x1xf32, #tpu.memory_space<vmem>>, vector<1x8x1xf32>
      %343 = vector.shape_cast %342 : vector<1x8x1xf32> to vector<8x1xf32>
      %344 = vector.broadcast %343 : vector<8x1xf32> to vector<8x16xf32>
      %345 = arith.divf %341, %344 : vector<8x16xf32>
      %c7_225 = arith.constant 7 : index
      %c0_226 = arith.constant 0 : index
      %c0_227 = arith.constant 0 : index
      %346 = vector.load %arg10[%c7_225, %c0_226, %c0_227] : memref<8x8x16xf32, #tpu.memory_space<vmem>>, vector<1x8x16xf32>
      %347 = vector.shape_cast %346 : vector<1x8x16xf32> to vector<8x16xf32>
      %c7_228 = arith.constant 7 : index
      %c0_229 = arith.constant 0 : index
      %c0_230 = arith.constant 0 : index
      %348 = vector.load %arg9[%c7_228, %c0_229, %c0_230] : memref<8x8x1xf32, #tpu.memory_space<vmem>>, vector<1x8x1xf32>
      %349 = vector.shape_cast %348 : vector<1x8x1xf32> to vector<8x1xf32>
      %350 = vector.broadcast %349 : vector<8x1xf32> to vector<8x16xf32>
      %351 = arith.divf %347, %350 : vector<8x16xf32>
      %352 = tpu.concatenate %309, %315, %321, %327, %333, %339, %345, %351 in 1 : vector<8x16xf32>, vector<8x16xf32>, vector<8x16xf32>, vector<8x16xf32>, vector<8x16xf32>, vector<8x16xf32>, vector<8x16xf32>, vector<8x16xf32> -> vector<8x128xf32>
      %c0_231 = arith.constant 0 : index
      %c0_232 = arith.constant 0 : index
      %c0_233 = arith.constant 0 : index
      %353 = vector.load %arg7[%c0_231, %c0_232, %c0_233] : memref<1x8x128xf32, #tpu.memory_space<vmem>>, vector<1x8x128xf32>
      %354 = vector.shape_cast %353 : vector<1x8x128xf32> to vector<8x128xf32>
      %355 = vector.shape_cast %352 : vector<8x128xf32> to vector<1x8x128xf32>
      tpu.vector_store %arg7[%c0_231, %c0_232, %c0_233], %355 {strides = array<i32>} : memref<1x8x128xf32, #tpu.memory_space<vmem>>, vector<1x8x128xf32>,
    } else {
    }
    return
  }
  func.func @transform_0(%arg0: i32, %arg1: i32, %arg2: i32) -> (i32, i32, i32) {
    %c0_i32 = arith.constant 0 : i32
    %c0_i32_0 = arith.constant 0 : i32
    return %arg0, %arg1, %c0_i32 : i32, i32, i32
  }
  func.func @transform_1(%arg0: i32, %arg1: i32, %arg2: i32) -> (i32, i32, i32) {
    %c0_i32 = arith.constant 0 : i32
    %c0_i32_0 = arith.constant 0 : i32
    return %arg0, %arg2, %c0_i32 : i32, i32, i32
  }
  func.func @transform_2(%arg0: i32, %arg1: i32, %arg2: i32) -> (i32, i32, i32) {
    %c0_i32 = arith.constant 0 : i32
    %c0_i32_0 = arith.constant 0 : i32
    return %arg0, %arg2, %c0_i32 : i32, i32, i32
  }
  func.func @transform_3(%arg0: i32, %arg1: i32, %arg2: i32) -> (i32, i32, i32) {
    %c0_i32 = arith.constant 0 : i32
    return %arg0, %arg1, %arg2 : i32, i32, i32
  }
  func.func @transform_4(%arg0: i32, %arg1: i32, %arg2: i32) -> (i32, i32, i32) {
    %c0_i32 = arith.constant 0 : i32
    %c0_i32_0 = arith.constant 0 : i32
    return %arg0, %arg1, %c0_i32 : i32, i32, i32
  }
}

</mosaic_0001>

<bundles_post_ra>
// kernel: tpu_custom_call.1
= control target key start
LH: loop header
LB: loop body
LE: loop exit
PB: predicated region body
PF: predicated region fallthrough
CT: control target
= control target key end

     0   :  { %s3362_s0 = inlined_call_operand.hbm [shape: f32[2,8,128], index: 0, kind: input, shape index: {}]   ;;  %s3363_s1 = inlined_call_operand.hbm [shape: f32[2,8,128], index: 1, kind: input, shape index: {}]   ;;  %s3364_s2 = inlined_call_operand.hbm [shape: f32[2,8,128], index: 2, kind: input, shape index: {}]   ;;  %s3365_s3 = inlined_call_operand.hbm [shape: f32[2,8,8], index: 3, kind: input, shape index: {}]   ;;  %s3366_s4 = inlined_call_operand.hbm [shape: f32[2,8,128], index: 4, kind: output, shape index: {}]  }
   0x1   :  { %3376 = sst [smem:[#allocation23_spill]] %s3363_s1 }
   0x2   :  { %9 = vsyncpa [#allocation6], 0 }
   0x3   :  { %11 = vsyncpa [#allocation6 + $0x1], 0 }
   0x4   :  { %12 = vsyncpa [#allocation9], 0 }
   0x5   :  { %14 = vsyncpa [#allocation9 + $0x1], 0 }
   0x6   :  { %15 = vsyncpa [#allocation12], 0 }
   0x7   :  { %17 = vsyncpa [#allocation12 + $0x1], 0 }
   0x8   :  { %18 = vsyncpa [#allocation7], 0 }
   0x9   :  { %20 = vsyncpa [#allocation7 + $0x1], 0  ;;  %s2742_s15 = smov 0   ;;  %s2744_s16 = smov 0  }
   0xa   :  { %s2746_s17 = smov 0   ;;  %s2748_s18 = smov 0  }
   0xb   :  { %s2750_s19 = smov 0   ;;  %s2752_s20 = smov 0  }
   0xc LB: > { %3377 = sst [smem:[#allocation18_spill]] %s2687_s17  ;;  %s2773_s21 = sadd.s32 4294967295, %s2699_s20   ;;  %s2699_s20 = sphi %s2752_s20, %s26_s20   ;;  %s2695_s19 = sphi %s2750_s19, %s3403_s19   ;;  %s2691_s18 = sphi %s2748_s18, %s3402_s18   ;;  %s2687_s17 = sphi %s2746_s17, %s3401_s17   ;;  %s2683_s16 = sphi %s2744_s16, %s3405_s16   ;;  %s2679_s15 = sphi %s2742_s15, %s3404_s15  }
   0xd   : > { %3378 = sst [smem:[#allocation19_spill]] %s2695_s19  ;;  %s2194_s22 = sadd.s32 4294967294, %s2699_s20  }
   0xe   : > { %3379 = sst [smem:[#allocation20_spill]] %s2699_s20  ;;  %s45_s23 = sadd.s32 1, %s2695_s19 }
   0xf   : > { %s54_s24 = sadd.s32 1, %s2687_s17  ;;  %p47_p0 = scmp.ge.s32.totalorder %s45_s23, 2 }
  0x10   : > { %p61_p1 = scmp.ne.s32.totalorder %s2687_s17, %s2683_s16  ;;  %p62_p2 = scmp.eq.s32.totalorder %s2699_s20, 0 }
  0x11   : > { %p67_p3 = scmp.ne.s32.totalorder %s2683_s16, %s2679_s15  ;;  %s3407_s23 = smov (%p47_p0, %s45_s23), 0 }
  0x12   : > { %3380 = sst [smem:[#allocation21_spill]] %s3407_s23  ;;  %p2785_p4 = por %p62_p2, %p61_p1 }
  0x13   : > { %p68_p5 = scmp.eq.s32.totalorder %s2773_s21, 0  ;;  %s49_s26 = ssub.s32 %s2695_s19, %s3407_s23 }
  0x14   : > { %p179_p6 = scmp.eq.s32.totalorder %s2773_s21, 1  ;;  %p52_p7 = scmp.eq.s32.totalorder %s49_s26, 0 }
  0x15   : > { %p2793_p8 = por %p68_p5, %p67_p3  ;;  %p185_p10 = scmp.eq.s32.totalorder %s2194_s22, 1 }
  0x16   : > { %p2797_p9 = por %p179_p6, %p61_p1  ;;  %p2378_p13 = scmp.lt.s32.totalorder %s2699_s20, 2 }
  0x17   : > { %s3382_s27 = scalar_select %p2793_p8, 1, 0 }
  0x18   : > { %s3383_s28 = scalar_select %p2797_p9, 1, 0 }
  0x19   : > { %s2802_s29 = scalar_select %p52_p7, %s2687_s17, %s54_s24  }
  0x1a   : > { %p2804_p11 = por %p185_p10, %p67_p3  ;;  %s2811_s5 = sand.u32 1, %s2687_s17  }
  0x1b   : > { %3384 = sst [smem:[#allocation22_spill]] %s2802_s29  ;;  %s2814_s6 = sshll.u32 %s2811_s5, 3 }
  0x1c   : > { %s3385_s30 = scalar_select %p2804_p11, 1, 0 }
  0x1d   : > { %s2817_s7 = sshll.u32 %s2695_s19, 7  ;;  %p2821_p0 = pnand %p2378_p13, %p2785_p4 }
  0x1e   : > { %s224_s9 = sand.u32 1, %s2699_s20   ;;  %s3387_s1 = sld [smem:[#allocation23_spill]] }
  0x1f   : > { %s3386_s8 = scalar_select %p2821_p0, 1, 0 }
  0x20   : > { %s228_s13 = scalar_lea.vmem [#allocation8], %s2814_s6  ;;  %s2837_s22 = scalar_lea.sflag [#allocation9], %s224_s9 }
  0x21   : > { %s236_s14 = sshll.u32 %s228_s13, 4  ;;  %p2843_p4 = pneg %p2821_p0  ;;  %s2834_s14 = int_to_ptr.vmem [resolvable:$true] %s236_s14 }
  0x24   : > { %s2830_s12 = scalar_lea.hbm %s3387_s1, %s2817_s7  ;;  %s2494_s11 = scalar_lea.hbm %s3387_s1, 256 }
  0x25   : > { %s2489_s24 = scalar_lea.hbm %s2830_s12, 128  ;;  %p2495_p7 = scmp.lt.u32.totalorder %s2830_s12, %s3387_s1 }
  0x26   : > { %p2490_p3 = scmp.ne.s32.totalorder %s2830_s12, %s2489_s24  ;;  %p2496_p10 = scmp.lt.u32.totalorder %s2494_s11, %s2489_s24 }
  0x27   : > { %p2498_p12 = scmp.lt.u32.totalorder %s2489_s24, %s2830_s12 }
  0x28   : > { %p2492_p5 = pnand %p2843_p4, %p2490_p3  ;;  %p2497_p13 = por %p2496_p10, %p2495_p7 }
  0x2a   : > { %p2493_p6 = pneg %p2492_p5  ;;  %p2499_p1 = por %p2498_p12, %p2497_p13 }
  0x2c   : > { %p2500_p2 = pnand %p2499_p1, %p2493_p6 }
  0x2e   : > { %2503 = shalt.err (!%p2500_p2)
}
  0x2f   : > { %s2504_s9 = scalar_lea.vmem %s2834_s14, 128  ;;  %s2701_s26 = smov [#allocation8]  }
  0x30   : > { %p2505_p3 = scmp.ne.s32.totalorder %s2834_s14, %s2504_s9  ;;  %s2509_s10 = sshll.u32 %s2701_s26, 4  ;;  %s2510_s10 = int_to_ptr.vmem [resolvable:$false] %s2509_s10 }
  0x31   : > { %s2511_s23 = scalar_lea.vmem %s2510_s10, 256  ;;  %p2512_p9 = scmp.lt.s32.totalorder %s2834_s14, %s2510_s10 }
  0x32   : > { %p2507_p5 = pnand %p2505_p3, %p2843_p4  ;;  %p2513_p8 = scmp.lt.s32.totalorder %s2511_s23, %s2504_s9 }
  0x34   : > { %p2508_p11 = pneg %p2507_p5  ;;  %p2514_p7 = por %p2513_p8, %p2512_p9 }
  0x36   : > { %p2515_p10 = pnand %p2514_p7, %p2508_p11 }
  0x38   : > { %2518 = shalt.err (!%p2515_p10)
}
  0x39   : > { %2367 = dma.hbm_to_vmem [thread:$0]  (!%p2821_p0), %s2830_s12, 128, %s2834_s14, %s2837_s22  }
  0x3a   : > { %p3389_p12 = scmp.lt.s32.totalorder %s2699_s20, 3  ;;  %p3390_p1 = scmp.ge.s32.totalorder %s2699_s20, 1 }
  0x3b   : > { %s2879_s9 = scalar_lea.hbm %s3362_s0, %s2817_s7  ;;  %s209_s26 = scalar_lea.vmem [#allocation5], %s2814_s6 }
  0x3c   : > { %p2871_p2 = pnand %p3390_p1, %p3389_p12  ;;  %s217_s10 = sshll.u32 %s209_s26, 4  ;;  %s2882_s10 = int_to_ptr.vmem [resolvable:$true] %s217_s10 }
  0x3d   : > { %s2888_s23 = scalar_lea.hbm %s3364_s2, %s2817_s7  ;;  %s206_s1 = scalar_lea.sflag [#allocation6], %s2811_s5 }
  0x3e   : > { %s3391_s24 = scalar_select %p2871_p2, 1, 0 }
  0x3f   : > { %s2519_s19 = scalar_lea.hbm %s2879_s9, 128  ;;  %s2524_s29 = scalar_lea.hbm %s3362_s0, 256 }
  0x40   : > { %p2520_p8 = scmp.ne.s32.totalorder %s2879_s9, %s2519_s19  ;;  %p2525_p6 = scmp.lt.u32.totalorder %s2879_s9, %s3362_s0 }
  0x41   : > { %p2526_p13 = scmp.lt.u32.totalorder %s2524_s29, %s2519_s19  ;;  %p2528_p5 = scmp.lt.u32.totalorder %s2519_s19, %s2879_s9 }
  0x42   : > { %p2522_p9 = pnand %p2520_p8, %p2843_p4 }
  0x43   : > { %p2527_p3 = por %p2526_p13, %p2525_p6 }
  0x44   : > { %p2523_p11 = pneg %p2522_p9 }
  0x45   : > { %p2529_p7 = por %p2528_p5, %p2527_p3 }
  0x47   : > { %p2530_p10 = pnand %p2529_p7, %p2523_p11 }
  0x49   : > { %2533 = shalt.err (!%p2530_p10)
}
  0x4a   : > { %s2534_s26 = scalar_lea.vmem %s2882_s10, 128  ;;  %s2702_s12 = smov [#allocation5]  }
  0x4b   : > { %p2535_p12 = scmp.ne.s32.totalorder %s2882_s10, %s2534_s26  ;;  %s2539_s14 = sshll.u32 %s2702_s12, 4  ;;  %s2540_s14 = int_to_ptr.vmem [resolvable:$false] %s2539_s14 }
  0x4c   : > { %s2541_s17 = scalar_lea.vmem %s2540_s14, 256  ;;  %p2542_p9 = scmp.lt.s32.totalorder %s2882_s10, %s2540_s14 }
  0x4d   : > { %p2537_p1 = pnand %p2535_p12, %p2843_p4  ;;  %p2543_p2 = scmp.lt.s32.totalorder %s2541_s17, %s2534_s26 }
  0x4f   : > { %p2538_p8 = pneg %p2537_p1  ;;  %p2544_p6 = por %p2543_p2, %p2542_p9 }
  0x51   : > { %p2545_p13 = pnand %p2544_p6, %p2538_p8 }
  0x53   : > { %2548 = shalt.err (!%p2545_p13)
}
  0x54   : > { %2364 = dma.hbm_to_vmem [thread:$0]  (!%p2821_p0), %s2879_s9, 128, %s2882_s10, %s206_s1  }
  0x55   : > { %s247_s19 = scalar_lea.vmem [#allocation10], %s2814_s6  ;;  %s2549_s29 = scalar_lea.hbm %s2888_s23, 128 }
  0x56   : > { %s255_s20 = sshll.u32 %s247_s19, 4  ;;  %p2550_p11 = scmp.ne.s32.totalorder %s2888_s23, %s2549_s29  ;;  %s256_s20 = int_to_ptr.vmem [resolvable:$true] %s255_s20 }
  0x57   : > { %s2554_s26 = scalar_lea.hbm %s3364_s2, 256  ;;  %p2555_p5 = scmp.lt.u32.totalorder %s2888_s23, %s3364_s2 }
  0x58   : > { %p2552_p2 = pnand %p2550_p11, %p2843_p4  ;;  %p2556_p7 = scmp.lt.u32.totalorder %s2554_s26, %s2549_s29 }
  0x59   : > { %p2558_p12 = scmp.lt.u32.totalorder %s2549_s29, %s2888_s23 }
  0x5a   : > { %p2553_p3 = pneg %p2552_p2  ;;  %p2557_p10 = por %p2556_p7, %p2555_p5 }
  0x5c   : > { %p2559_p1 = por %p2558_p12, %p2557_p10 }
  0x5e   : > { %p2560_p8 = pnand %p2559_p1, %p2553_p3 }
  0x60   : > { %2563 = shalt.err (!%p2560_p8)
}
  0x61   : > { %s2564_s1 = scalar_lea.vmem %s256_s20, 128  ;;  %s2703_s9 = smov [#allocation10]  }
  0x62   : > { %p2565_p9 = scmp.ne.s32.totalorder %s256_s20, %s2564_s1  ;;  %s2569_s10 = sshll.u32 %s2703_s9, 4  ;;  %s2570_s10 = int_to_ptr.vmem [resolvable:$false] %s2569_s10 }
  0x63   : > { %s2571_s17 = scalar_lea.vmem %s2570_s10, 256  ;;  %p2572_p11 = scmp.lt.s32.totalorder %s256_s20, %s2570_s10 }
  0x64   : > { %p2567_p6 = pnand %p2565_p9, %p2843_p4  ;;  %p2573_p2 = scmp.lt.s32.totalorder %s2571_s17, %s2564_s1 }
  0x66   : > { %p2568_p13 = pneg %p2567_p6  ;;  %p2574_p0 = por %p2573_p2, %p2572_p11 }
  0x68   : > { %p2575_p5 = pnand %p2574_p0, %p2568_p13 }
  0x6a   : > { %2578 = shalt.err (!%p2575_p5)
}
  0x6b   : > { %p3392_p7 = scmp.ne.s32.totalorder %s3386_s8, 0  ;;  %s2935_s11 = scalar_lea.hbm %s3365_s3, %s2817_s7 }
  0x6c   : > { %s266_s13 = scalar_lea.vmem [#allocation11], %s2814_s6  ;;  %s263_s12 = scalar_lea.sflag [#allocation12], %s2811_s5 }
  0x6d   : > { %2370 = dma.hbm_to_vmem [thread:$0]  (!%p3392_p7), %s2888_s23, 128, %s256_s20, %s2837_s22  }
  0x6e   : > { %s275_s26 = sshll.u32 %s266_s13, 4  ;;  %s2579_s14 = scalar_lea.hbm %s2935_s11, 128  ;;  %s276_s26 = int_to_ptr.vmem [resolvable:$true] %s275_s26 }
  0x6f   : > { %p2580_p0 = scmp.ne.s32.totalorder %s2935_s11, %s2579_s14  ;;  %s2584_s23 = scalar_lea.hbm %s3365_s3, 256 }
  0x70   : > { %p2585_p12 = scmp.lt.u32.totalorder %s2935_s11, %s3365_s3  ;;  %p2586_p1 = scmp.lt.u32.totalorder %s2584_s23, %s2579_s14 }
  0x71   : > { %p2582_p3 = pnand %p2580_p0, %p2843_p4  ;;  %p2588_p9 = scmp.lt.u32.totalorder %s2579_s14, %s2935_s11 }
  0x72   : > { %p2587_p8 = por %p2586_p1, %p2585_p12 }
  0x73   : > { %p2583_p10 = pneg %p2582_p3 }
  0x74   : > { %p2589_p6 = por %p2588_p9, %p2587_p8 }
  0x76   : > { %p2590_p13 = pnand %p2589_p6, %p2583_p10 }
  0x78   : > { %2593 = shalt.err (!%p2590_p13)
}
  0x79   : > { %s2594_s5 = scalar_lea.vmem %s276_s26, 128  ;;  %s2704_s6 = smov [#allocation11]  }
  0x7a   : > { %p2595_p11 = scmp.ne.s32.totalorder %s276_s26, %s2594_s5  ;;  %s2599_s9 = sshll.u32 %s2704_s6, 4  ;;  %s2600_s9 = int_to_ptr.vmem [resolvable:$false] %s2599_s9 }
  0x7b   : > { %s2601_s10 = scalar_lea.vmem %s2600_s9, 256  ;;  %p2602_p0 = scmp.lt.s32.totalorder %s276_s26, %s2600_s9 }
  0x7c   : > { %p2597_p2 = pnand %p2595_p11, %p2843_p4  ;;  %p2603_p3 = scmp.lt.s32.totalorder %s2601_s10, %s2594_s5 }
  0x7e   : > { %p2598_p5 = pneg %p2597_p2  ;;  %p2604_p7 = por %p2603_p3, %p2602_p0 }
  0x80   : > { %p2605_p1 = pnand %p2604_p7, %p2598_p5 }
  0x82   : > { %2608 = shalt.err (!%p2605_p1)
}
  0x83   : > { %p3393_p12 = scmp.ne.s32.totalorder %s3386_s8, 0  ;;  %p3394_p10 = scmp.ne.s32.totalorder %s3391_s24, 0 }
  0x84   : > { %s2959_s25 = sand.u32 (!%p3394_p10), 1, %s2683_s16   ;;  %p3395_p4 = scmp.ne.s32.totalorder (!%p3394_p10), %s3382_s27, 0 }
  0x85   : > { %2373 = dma.hbm_to_vmem [thread:$0]  (!%p3393_p12), %s2935_s11, 128, %s276_s26, %s263_s12  }
  0x86   : > { %284 = sbr.rel (%p3394_p10) target bundleno = 1762 (0x6e2), region = 36  ;;  %s2962_s17 = sshll.u32 (!%p3394_p10), %s2959_s25, 3 }
  0x87   : > { %s287_s19 = scalar_lea.sflag (!%p3394_p10), [#allocation6], %s2959_s25  ;;  %s290_s29 = scalar_lea.vmem (!%p3394_p10), [#allocation5], %s2962_s17 }
  0x8d   : > { %2662 = dma.done.wait (%p3395_p4), %s287_s19, 128  }
  0x8e   : > { %2664 = vsyncadd (%p3395_p4), %s287_s19, 4294967168  ;;  %s295_s8 = sand.u32 1, %s2773_s21   ;;  %s299_s11 = scalar_lea.vmem [#allocation8], %s2962_s17 }
  0x8f   : > { %s296_s24 = scalar_lea.sflag [#allocation9], %s295_s8 }
  0x90   : > { %2666 = dma.done.wait (%p3395_p4), %s296_s24, 256  }
  0x91   : > { %2668 = vsyncadd (%p3395_p4), %s296_s24, 4294967040  ;;  %s308_s13 = scalar_lea.vmem [#allocation10], %s2962_s17  ;;  %s314_s26 = scalar_lea.sflag [#allocation12], %s2959_s25 }
  0x92   : > { %s317_s12 = scalar_lea.vmem [#allocation11], %s2962_s17 }
  0x93   : > { %2670 = dma.done.wait (%p3395_p4), %s314_s26, 128  }
  0x94   : > { %2672 = vsyncadd (%p3395_p4), %s314_s26, 4294967168  ;;  %vm378_vm0 = vcmask 130048   ;;  %v2705_v0 = vmov 0.0   ;;  %vm2706_vm1 = vmmov 0   ;;  %v389_v1 = vld [vmem:[%s299_s11] sm:$0xff]  ;;  %v387_v2 = vld [vmem:[%s290_s29] sm:$0xff] }
  0x95   : > { %2271 = vmatprep.subr.mxu0 %v2705_v0  ;;  %379 = vst.msk [vmem:[#allocation4] sm:$0xff] %vm378_vm0, %v2705_v0  ;;  %380 = vst.msk [vmem:[#allocation4 + $0x8] sm:$0xff] %vm378_vm0, %v2705_v0  ;;  %2273 = vmatprep.mubr.msk.f32.mxu0 %vm2706_vm1, %v2705_v0  ;;  %v388_v3 = vmul.f32 0.25, %v387_v2  ;;  %vm361_vm2 = vcmask 7168   ;;  %v2707_v4 = vmov -inf   ;;  %v3036_v5 = vld [vmem:[%s317_s12] sm:$0xff] }
  0x96   : > { %381 = vst.msk [vmem:[#allocation4 + $0x10] sm:$0xff] %vm378_vm0, %v2705_v0  ;;  %382 = vst.msk [vmem:[#allocation4 + $0x18] sm:$0xff] %vm378_vm0, %v2705_v0  ;;  %2276 = vmatprep.subr.mxu1 %v2705_v0  ;;  %2278 = vmatprep.mubr.msk.f32.mxu1 %vm2706_vm1, %v2705_v0  ;;  %vm470_vm3 = vcmask 64512   ;;  %v2708_v10 = vmov 0   ;;  %s2709_s21 = smov 112   ;;  %s2710_s27 = smov 96  }
  0x97   : > { %383 = vst.msk [vmem:[#allocation4 + $0x20] sm:$0xff] %vm378_vm0, %v2705_v0  ;;  %384 = vst.msk [vmem:[#allocation4 + $0x28] sm:$0xff] %vm378_vm0, %v2705_v0  ;;  %2272 = vmatpush3.xpose.msk.msra.mxu0 %vm378_vm0, %v389_v1  ;;  %2439 = vset.pattern.permute.xlu0 %v2708_v10  ;;  %s2711_s14 = smov 80   ;;  %s2712_s1 = smov 64   ;;  %v3057_v15 = vld [vmem:[%s308_s13] sm:$0xff]  ;;  %vm2012_vm4 = vcmask 261120  }
  0x98   : > { %385 = vst.msk [vmem:[#allocation4 + $0x30] sm:$0xff] %vm378_vm0, %v2705_v0  ;;  %386 = vst.msk [vmem:[#allocation4 + $0x38] sm:$0xff] %vm378_vm0, %v2705_v0  ;;  %2286 = vmatprep.subr.mxu0 %v2705_v0  ;;  %2440 = vset.pattern.permute.xlu1 %v2708_v10  ;;  %s2713_s22 = smov 48   ;;  %s2714_s23 = smov 32   ;;  %vm2014_vm5 = vcmask 392192   ;;  %vm2016_vm6 = vcmask 523264  }
  0x99   : > { %362 = vst.msk [vmem:[#allocation2] sm:$0xff] %vm361_vm2, %v2707_v4  ;;  %363 = vst.msk [vmem:[#allocation2 + $0x8] sm:$0xff] %vm361_vm2, %v2707_v4  ;;  %579 = vrot.lane.b32.xlu1 %v389_v1, %s2709_s21  ;;  %s2715_s20 = smov 16   ;;  %2277 = vmatpush3.msra.mxu1 %v3057_v15  ;;  %vm2018_vm7 = vcmask 654336   ;;  %vm2020_vm8 = vcmask 785408   ;;  %s2236_s7 = sshll.u32 %s2691_s18, 7 }
  0x9a   : > { %2274 = vmatmul.mubr.msk.f32.vlgmr.msra.gmra.mrb[0].mxu0 %vm378_vm0, %v388_v3  ;;  %364 = vst.msk [vmem:[#allocation2 + $0x10] sm:$0xff] %vm361_vm2, %v2707_v4  ;;  %365 = vst.msk [vmem:[#allocation2 + $0x18] sm:$0xff] %vm361_vm2, %v2707_v4  ;;  %2281 = vmatprep.subr.mxu1 %v2705_v0  ;;  %s356_s5 = scalar_lea.vmem [#allocation13], %s2962_s17  ;;  %vm2022_vm9 = vcmask 916480   ;;  %s3313_s19 = scalar_lea.hbm %s3366_s4, %s2236_s7 }
  0x9b   : > { %2288 = vmatprep.mubr.msk.f32.mxu0 %vm2706_vm1, %v2705_v0  ;;  %366 = vst.msk [vmem:[#allocation2 + $0x20] sm:$0xff] %vm361_vm2, %v2707_v4  ;;  %367 = vst.msk [vmem:[#allocation2 + $0x28] sm:$0xff] %vm361_vm2, %v2707_v4  ;;  %s2040_s6 = sshll.u32 %s356_s5, 4  ;;  %s2026_s18 = scalar_lea.sflag [#allocation7], %s2959_s25  ;;  %s3315_s6 = int_to_ptr.vmem [resolvable:$true] %s2040_s6 }
  0x9c   : > { %368 = vst.msk [vmem:[#allocation2 + $0x30] sm:$0xff] %vm361_vm2, %v2707_v4  ;;  %369 = vst.msk [vmem:[#allocation2 + $0x38] sm:$0xff] %vm361_vm2, %v2707_v4  ;;  %s2609_s17 = scalar_lea.vmem %s3315_s6, 128  ;;  %p3396_p8 = scmp.ne.s32.totalorder %s3383_s28, 0 }
  0x9d   : > { %370 = vst.msk [vmem:[#allocation3] sm:$0xff] %vm361_vm2, %v2705_v0  ;;  %371 = vst.msk [vmem:[#allocation3 + $0x8] sm:$0xff] %vm361_vm2, %v2705_v0  ;;  %577 = vrot.lane.b32.xlu1 %v388_v3, %s2709_s21  ;;  %p2610_p7 = scmp.ne.s32.totalorder %s3315_s6, %s2609_s17  ;;  %s2716_s29 = smov [#allocation13]  }
  0x9e   : > { %372 = vst.msk [vmem:[#allocation3 + $0x10] sm:$0xff] %vm361_vm2, %v2705_v0  ;;  %373 = vst.msk [vmem:[#allocation3 + $0x18] sm:$0xff] %vm361_vm2, %v2705_v0  ;;  %s2613_s8 = sshll.u32 %s2716_s29, 4  ;;  %s2614_s8 = int_to_ptr.vmem [resolvable:$false] %s2613_s8 }
  0x9f   : > { %374 = vst.msk [vmem:[#allocation3 + $0x20] sm:$0xff] %vm361_vm2, %v2705_v0  ;;  %375 = vst.msk [vmem:[#allocation3 + $0x28] sm:$0xff] %vm361_vm2, %v2705_v0  ;;  %p2611_p9 = pnand %p2610_p7, %p3396_p8  ;;  %s2615_s24 = scalar_lea.vmem %s2614_s8, 256 }
  0xa0   : > { %376 = vst.msk [vmem:[#allocation3 + $0x30] sm:$0xff] %vm361_vm2, %v2705_v0  ;;  %377 = vst.msk [vmem:[#allocation3 + $0x38] sm:$0xff] %vm361_vm2, %v2705_v0  ;;  %v469_v11 = vld [vmem:[#allocation2] sm:$0xff]  ;;  %p2616_p13 = scmp.lt.s32.totalorder %s3315_s6, %s2614_s8  ;;  %p2617_p11 = scmp.lt.s32.totalorder %s2615_s24, %s2609_s17 }
  0xa1   : > { %770 = vrot.lane.b32.xlu1 %v389_v1, %s2710_s27  ;;  %p2612_p6 = pneg %p2611_p9 }
  0xa2   : > { %p2618_p2 = por %p2617_p11, %p2616_p13 }
  0xa4   : > { %v486_v37 = vld [vmem:[#allocation3] sm:$0xff]  ;;  %p2619_p5 = pnand %p2618_p2, %p2612_p6 }
  0xa5   : > { %768 = vrot.lane.b32.xlu1 %v388_v3, %s2710_s27 }
  0xa9   : > { %960 = vrot.lane.b32.xlu1 %v389_v1, %s2711_s14 }
  0xad   : > { %958 = vrot.lane.b32.xlu1 %v388_v3, %s2711_s14 }
  0xb1   : > { %1150 = vrot.lane.b32.xlu1 %v389_v1, %s2712_s1 }
  0xb5   : > { %1148 = vrot.lane.b32.xlu1 %v388_v3, %s2712_s1 }
  0xb9   : > { %1340 = vrot.lane.b32.xlu1 %v389_v1, %s2713_s22 }
  0xbd   : > { %1338 = vrot.lane.b32.xlu1 %v388_v3, %s2713_s22 }
  0xc1   : > { %1530 = vrot.lane.b32.xlu1 %v389_v1, %s2714_s23 }
  0xc5   : > { %1528 = vrot.lane.b32.xlu1 %v388_v3, %s2714_s23 }
  0xc9   : > { %1718 = vrot.lane.b32.xlu1 %v388_v3, %s2715_s20 }
 0x10b   : > { %v580_v16 = vpop.permute.xlu1 %579 }
 0x10f   : > { %v578_v17 = vpop.permute.xlu1 %577 }
 0x113   : > { %v771_v18 = vpop.permute.xlu1 %770 }
 0x117   : > { %v769_v19 = vpop.permute.xlu1 %768 }
 0x11b   : > { %v961_v20 = vpop.permute.xlu1 %960 }
 0x11f   : > { %v959_v21 = vpop.permute.xlu1 %958 }
 0x123   : > { %v1151_v25 = vpop.permute.xlu1 %1150 }
 0x127   : > { %v1149_v26 = vpop.permute.xlu1 %1148 }
 0x12b   : > { %v1341_v29 = vpop.permute.xlu1 %1340 }
 0x12f   : > { %v1339_v30 = vpop.permute.xlu1 %1338 }
 0x133   : > { %v1531_v31 = vpop.permute.xlu1 %1530 }
 0x137   : > { %v1529_v32 = vpop.permute.xlu1 %1528 }
 0x13b   : > { %v1719_v34 = vpop.permute.xlu1 %1718 }
 0x16d   : > { %v465_v6 = vpop.f32.mrb[0].mxu0 }
 0x16e   : > { %v466_v7 = vadd.f32 %v465_v6, %v3036_v5  ;;  %v2275_v8 = vpop.f32.mrb[1].mxu0 }
 0x16f   : > { %v656_v8 = vld [vmem:[#allocation2 + $0x8] sm:$0xff] }
 0x170   : > { %v471_v9 = vsel %vm470_vm3, %v466_v7, -inf }
 0x171   : > { %472 = vmax.xlane.f32.xlu0 %v471_v9 }
 0x1fe   : > { %v473_v12 = vpop.xlane.xlu0 %472 }
 0x1ff   : > { %v474_v13 = vmax.f32 %v469_v11, %v473_v12 }
 0x201   : > { %v475_v14 = vsub.f32 %v469_v11, %v474_v13  ;;  %576 = vst.msk [vmem:[#allocation2] sm:$0xff] %vm361_vm2, %v474_v13  ;;  %480 = vperm.xlu0 %2439, %v474_v13   ;;  %v847_v11 = vld [vmem:[#allocation2 + $0x10] sm:$0xff] }
 0x203   : > { %v476_v35 = vmul.f32 1.442695, %v475_v14 }
 0x205   : > { %1720 = vrot.lane.b32.xlu0 %v389_v1, %s2715_s20 }
 0x280   : > { %v481_v22 = vpop.permute.xlu0 %480 }
 0x281   : > { %v483_v23 = vsub.f32 %v466_v7, %v481_v22 }
 0x283   : > { %v484_v24 = vmul.f32 1.442695, %v483_v23 }
 0x284   : > { %v1721_v33 = vpop.permute.xlu0 %1720 }
 0x285   : > { %2441 = vpow2.f32 %v484_v24  ;;  %v3152_v24 = vld [vmem:[#allocation2 + $0x28] sm:$0xff] }
 0x286   : > { %2443 = vpow2.f32 %v476_v35 }
 0x28f   : > { %v2442_v27 = vpop.eup %2441 }
 0x290   : > { %2279 = vmatmul.mubr.msk.f32.vlgmr.msra.gmra.mrb[0].mxu1 %vm470_vm3, %v2442_v27  ;;  %v488_v28 = vsel %vm470_vm3, %v2442_v27, 0.0  ;;  %v2444_v36 = vpop.eup %2443 }
 0x291   : > { %2282 = vmatpush3.xpose.msk.msra.mxu1 %vm378_vm0, %v580_v16  ;;  %489 = vadd.xlane.f32.xlu0 %v488_v28  ;;  %v487_v38 = vmul.f32 %v2444_v36, %v486_v37 }
 0x292   : > { %2283 = vmatprep.mubr.msk.f32.mxu1 %vm2706_vm1, %v2705_v0  ;;  %2291 = vmatprep.subr.mxu1 %v2705_v0 }
 0x294   : > { %2284 = vmatmul.mubr.msk.f32.vlgmr.msra.gmra.mrb[2].mxu1 %vm378_vm0, %v578_v17  ;;  %v3136_v17 = vld [vmem:[#allocation2 + $0x18] sm:$0xff] }
 0x295   : > { %2292 = vmatpush3.xpose.msk.msra.mxu1 %vm378_vm0, %v771_v18  ;;  %2293 = vmatprep.mubr.msk.f32.mxu1 %vm2706_vm1, %v2705_v0 }
 0x296   : > { %2301 = vmatprep.subr.mxu1 %v2705_v0 }
 0x298   : > { %2294 = vmatmul.mubr.msk.f32.vlgmr.msra.gmra.mrb[4].mxu1 %vm378_vm0, %v769_v19 }
 0x299   : > { %2302 = vmatpush3.xpose.msk.msra.mxu1 %vm378_vm0, %v961_v20  ;;  %2303 = vmatprep.mubr.msk.f32.mxu1 %vm2706_vm1, %v2705_v0  ;;  %v3142_v20 = vld [vmem:[#allocation2 + $0x20] sm:$0xff] }
 0x29a   : > { %2311 = vmatprep.subr.mxu1 %v2705_v0 }
 0x29c   : > { %2304 = vmatmul.mubr.msk.f32.vlgmr.msra.gmra.mrb[6].mxu1 %vm378_vm0, %v959_v21 }
 0x29d   : > { %2312 = vmatpush3.xpose.msk.msra.mxu1 %vm378_vm0, %v1151_v25  ;;  %2313 = vmatprep.mubr.msk.f32.mxu1 %vm2706_vm1, %v2705_v0 }
 0x29e   : > { %2321 = vmatprep.subr.mxu1 %v2705_v0 }
 0x2a0   : > { %2314 = vmatmul.mubr.msk.f32.vlgmr.msra.gmra.mrb[8].mxu1 %vm378_vm0, %v1149_v26 }
 0x2a1   : > { %2322 = vmatpush3.xpose.msk.msra.mxu1 %vm378_vm0, %v1341_v29  ;;  %2323 = vmatprep.mubr.msk.f32.mxu1 %vm2706_vm1, %v2705_v0 }
 0x2a2   : > { %2331 = vmatprep.subr.mxu1 %v2705_v0 }
 0x2a4   : > { %2324 = vmatmul.mubr.msk.f32.vlgmr.msra.gmra.mrb[10].mxu1 %vm378_vm0, %v1339_v30  ;;  %v3168_v30 = vld [vmem:[#allocation2 + $0x38] sm:$0xff] }
 0x2a5   : > { %2332 = vmatpush3.xpose.msk.msra.mxu1 %vm378_vm0, %v1531_v31  ;;  %2333 = vmatprep.mubr.msk.f32.mxu1 %vm2706_vm1, %v2705_v0 }
 0x2a6   : > { %2341 = vmatprep.subr.mxu1 %v2705_v0 }
 0x2a7   : > { %689 = vrot.lane.b32.xlu0 %v3057_v15, %s2709_s21 }
 0x2a8   : > { %2334 = vmatmul.mubr.msk.f32.vlgmr.msra.gmra.mrb[12].mxu1 %vm378_vm0, %v1529_v32 }
 0x2a9   : > { %2342 = vmatpush3.xpose.msk.msra.mxu1 %vm378_vm0, %v1721_v33  ;;  %2343 = vmatprep.mubr.msk.f32.mxu1 %vm2706_vm1, %v2705_v0  ;;  %v494_v33 = vld [vmem:[#allocation4] sm:$0xff] }
 0x2ac   : > { %2344 = vmatmul.mubr.msk.f32.vlgmr.msra.gmra.mrb[14].mxu1 %vm378_vm0, %v1719_v34 }
 0x31e   : > { %v490_v39 = vpop.xlane.xlu0 %489 }
 0x31f   : > { %v491_v40 = vadd.f32 %v490_v39, %v487_v38 }
 0x321   : > { %493 = vst.msk [vmem:[#allocation3] sm:$0xff] %vm361_vm2, %v491_v40 }
 0x322   : > { %v690_v62 = vpop.permute.xlu0 %689 }
 0x323   : > { %2287 = vmatpush3.msra.mxu0 %v690_v62 }
 0x324   : > { %2296 = vmatprep.subr.mxu0 %v2705_v0 }
 0x363   : > { %v3100_v41 = vpop.f32.mrb[0].mxu1 }
 0x364   : > { %v2280_v42 = vpop.f32.mrb[1].mxu1 }
 0x367   : > { %v651_v43 = vpop.f32.mrb[2].mxu1 }
 0x368   : > { %v3103_v44 = vadd.f32 %v651_v43, %v3036_v5  ;;  %v2285_v45 = vpop.f32.mrb[3].mxu1 }
 0x36a   : > { %v657_v46 = vsel %vm470_vm3, %v3103_v44, -inf }
 0x36b   : > { %658 = vmax.xlane.f32.xlu1 %v657_v46  ;;  %v842_v47 = vpop.f32.mrb[4].mxu1 }
 0x36c   : > { %v3108_v48 = vadd.f32 %v842_v47, %v3036_v5  ;;  %v2295_v49 = vpop.f32.mrb[5].mxu1 }
 0x36e   : > { %v848_v50 = vsel %vm470_vm3, %v3108_v48, -inf }
 0x36f   : > { %v1032_v51 = vpop.f32.mrb[6].mxu1  ;;  %849 = vmax.xlane.f32.xlu0 %v848_v50 }
 0x370   : > { %v3113_v52 = vadd.f32 %v1032_v51, %v3036_v5  ;;  %v2305_v53 = vpop.f32.mrb[7].mxu1 }
 0x372   : > { %v1038_v54 = vsel %vm470_vm3, %v3113_v52, -inf }
 0x373   : > { %1039 = vmax.xlane.f32.xlu1 %v1038_v54  ;;  %v1222_v55 = vpop.f32.mrb[8].mxu1 }
 0x374   : > { %v3118_v56 = vadd.f32 %v1222_v55, %v3036_v5  ;;  %v2315_v57 = vpop.f32.mrb[9].mxu1 }
 0x376   : > { %v1228_v58 = vsel %vm470_vm3, %v3118_v56, -inf }
 0x377   : > { %1229 = vmax.xlane.f32.xlu1 %v1228_v58  ;;  %v1412_v59 = vpop.f32.mrb[10].mxu1 }
 0x378   : > { %v3123_v60 = vadd.f32 %v1412_v59, %v3036_v5  ;;  %v2325_v61 = vpop.f32.mrb[11].mxu1 }
 0x379   : > { %v3206_v61 = vld [vmem:[#allocation2 + $0x30] sm:$0xff] }
 0x37a   : > { %v1418_v63 = vsel %vm470_vm3, %v3123_v60, -inf }
 0x37b   : > { %v1602_v1 = vpop.f32.mrb[12].mxu1  ;;  %1419 = vmax.xlane.f32.xlu1 %v1418_v63 }
 0x37c   : > { %v2335_v2 = vpop.f32.mrb[13].mxu1 }
 0x37f   : > { %v1792_v3 = vpop.f32.mrb[14].mxu1 }
 0x380   : > { %v3129_v4 = vadd.f32 %v1792_v3, %v3036_v5  ;;  %v2345_v6 = vpop.f32.mrb[15].mxu1 }
 0x382   : > { %v1798_v7 = vsel %vm470_vm3, %v3129_v4, -inf }
 0x383   : > { %1799 = vmax.xlane.f32.xlu1 %v1798_v7 }
 0x394   : > { %497 = vperm.xlu1 %2440, %v2444_v36   ;;  %v3179_v36 = vadd.f32 %v1602_v1, %v3036_v5 }
 0x396   : > { %v1608_v39 = vsel %vm470_vm3, %v3179_v36, -inf }
 0x398   : > { %879 = vrot.lane.b32.xlu1 %v3057_v15, %s2710_s27 }
 0x3f8   : > { %v659_v9 = vpop.xlane.xlu1 %658 }
 0x3f9   : > { %v660_v10 = vmax.f32 %v656_v8, %v659_v9 }
 0x3fb   : > { %v661_v12 = vsub.f32 %v656_v8, %v660_v10  ;;  %767 = vst.msk [vmem:[#allocation2 + $0x8] sm:$0xff] %vm361_vm2, %v660_v10  ;;  %666 = vperm.xlu0 %2439, %v660_v10  }
 0x3fc   : > { %v850_v13 = vpop.xlane.xlu0 %849 }
 0x3fd   : > { %v662_v14 = vmul.f32 1.442695, %v661_v12  ;;  %v851_v16 = vmax.f32 %v847_v11, %v850_v13 }
 0x3ff   : > { %2445 = vpow2.f32 %v662_v14  ;;  %957 = vst.msk [vmem:[#allocation2 + $0x10] sm:$0xff] %vm361_vm2, %v851_v16  ;;  %857 = vperm.xlu1 %2440, %v851_v16   ;;  %v852_v40 = vsub.f32 %v847_v11, %v851_v16 }
 0x400   : > { %v1040_v18 = vpop.xlane.xlu1 %1039 }
 0x401   : > { %v3140_v19 = vmax.f32 %v3136_v17, %v1040_v18  ;;  %v853_v42 = vmul.f32 1.442695, %v852_v40 }
 0x403   : > { %v1042_v21 = vsub.f32 %v3136_v17, %v3140_v19  ;;  %1147 = vst.msk [vmem:[#allocation2 + $0x18] sm:$0xff] %vm361_vm2, %v3140_v19  ;;  %1047 = vperm.xlu1 %2440, %v3140_v19   ;;  %2447 = vpow2.f32 %v853_v42 }
 0x404   : > { %v1230_v22 = vpop.xlane.xlu1 %1229 }
 0x405   : > { %v3150_v23 = vmax.f32 %v3142_v20, %v1230_v22  ;;  %v1043_v59 = vmul.f32 1.442695, %v1042_v21  ;;  %v673_v22 = vld [vmem:[#allocation3 + $0x8] sm:$0xff] }
 0x407   : > { %v1232_v25 = vsub.f32 %v3142_v20, %v3150_v23  ;;  %1337 = vst.msk [vmem:[#allocation2 + $0x20] sm:$0xff] %vm361_vm2, %v3150_v23 }
 0x408   : > { %v1420_v26 = vpop.xlane.xlu1 %1419 }
 0x409   : > { %v3158_v27 = vpop.eup %2445  ;;  %v3161_v28 = vmax.f32 %v3152_v24, %v1420_v26 }
 0x40a   : > { %684 = vperm.xlu1 %2440, %v3158_v27   ;;  %v674_v26 = vmul.f32 %v3158_v27, %v673_v22 }
 0x40b   : > { %v1422_v29 = vsub.f32 %v3152_v24, %v3161_v28  ;;  %1527 = vst.msk [vmem:[#allocation2 + $0x28] sm:$0xff] %vm361_vm2, %v3161_v28  ;;  %v864_v24 = vld [vmem:[#allocation3 + $0x10] sm:$0xff] }
 0x40d   : > { %v3187_v43 = vpop.eup %2447  ;;  %v1423_v14 = vmul.f32 1.442695, %v1422_v29 }
 0x410   : > { %v1800_v31 = vpop.xlane.xlu1 %1799 }
 0x411   : > { %v3171_v32 = vmax.f32 %v3168_v30, %v1800_v31 }
 0x413   : > { %v1802_v34 = vsub.f32 %v3168_v30, %v3171_v32  ;;  %1907 = vst.msk [vmem:[#allocation2 + $0x38] sm:$0xff] %vm361_vm2, %v3171_v32  ;;  %1807 = vperm.xlu1 %2440, %v3171_v32   ;;  %v1244_v30 = vld [vmem:[#allocation3 + $0x20] sm:$0xff] }
 0x414   : > { %v498_v35 = vpop.permute.xlu1 %497 }
 0x415   : > { %v500_v37 = vmul.f32 %v498_v35, %v494_v33  ;;  %v1054_v33 = vld [vmem:[#allocation3 + $0x18] sm:$0xff] }
 0x417   : > { %v574_v38 = vadd.f32 %v3100_v41, %v500_v37 }
 0x418   : > { %v880_v5 = vpop.permute.xlu1 %879 }
 0x419   : > { %575 = vst.msk [vmem:[#allocation4] sm:$0xff] %vm378_vm0, %v574_v38 }
 0x41a   : > { %1609 = vmax.xlane.f32.xlu0 %v1608_v39 }
 0x430   : > { %1237 = vperm.xlu0 %2439, %v3150_v23  }
 0x434   : > { %1427 = vperm.xlu0 %2439, %v3161_v28  }
 0x438   : > { %875 = vperm.xlu0 %2439, %v3187_v43  }
 0x47a   : > { %v667_v45 = vpop.permute.xlu0 %666 }
 0x47b   : > { %v669_v41 = vsub.f32 %v3103_v44, %v667_v45 }
 0x47d   : > { %v670_v46 = vmul.f32 1.442695, %v669_v41 }
 0x47e   : > { %v858_v47 = vpop.permute.xlu1 %857 }
 0x47f   : > { %2449 = vpow2.f32 %v670_v46  ;;  %v860_v49 = vsub.f32 %v3108_v48, %v858_v47 }
 0x481   : > { %v861_v50 = vmul.f32 1.442695, %v860_v49  ;;  %v1233_v49 = vmul.f32 1.442695, %v1232_v25 }
 0x482   : > { %v1048_v51 = vpop.permute.xlu1 %1047 }
 0x483   : > { %2451 = vpow2.f32 %v861_v50  ;;  %v1050_v53 = vsub.f32 %v3113_v52, %v1048_v51  ;;  %v1803_v51 = vmul.f32 1.442695, %v1802_v34 }
 0x485   : > { %v1051_v54 = vmul.f32 1.442695, %v1050_v53 }
 0x487   : > { %2453 = vpow2.f32 %v1051_v54  ;;  %v1814_v54 = vld [vmem:[#allocation3 + $0x38] sm:$0xff] }
 0x488   : > { %2455 = vpow2.f32 %v1043_v59 }
 0x489   : > { %v2450_v55 = vpop.eup %2449  ;;  %v3208_v62 = vpop.permute.xlu1 %684 }
 0x48a   : > { %2289 = vmatmul.mubr.msk.f32.vlgmr.msra.gmra.mrb[2].mxu0 %vm470_vm3, %v2450_v55  ;;  %v675_v57 = vsel %vm470_vm3, %v2450_v55, 0.0 }
 0x48b   : > { %676 = vadd.xlane.f32.xlu1 %v675_v57  ;;  %2297 = vmatpush3.msra.mxu0 %v880_v5 }
 0x48c   : > { %2298 = vmatprep.mubr.msk.f32.mxu0 %vm2706_vm1, %v2705_v0  ;;  %2306 = vmatprep.subr.mxu0 %v2705_v0 }
 0x48d   : > { %v2452_v44 = vpop.eup %2451 }
 0x48e   : > { %2299 = vmatmul.mubr.msk.f32.vlgmr.msra.gmra.mrb[4].mxu0 %vm470_vm3, %v2452_v44  ;;  %v866_v48 = vsel %vm470_vm3, %v2452_v44, 0.0 }
 0x48f   : > { %867 = vadd.xlane.f32.xlu1 %v866_v48  ;;  %2308 = vmatprep.mubr.msk.f32.mxu0 %vm2706_vm1, %v2705_v0 }
 0x491   : > { %v3202_v52 = vpop.eup %2453 }
 0x492   : > { %v1056_v58 = vsel %vm470_vm3, %v3202_v52, 0.0  ;;  %v1808_v3 = vpop.permute.xlu1 %1807  ;;  %v2456_v6 = vpop.eup %2455 }
 0x493   : > { %1057 = vadd.xlane.f32.xlu1 %v1056_v58  ;;  %v1810_v7 = vsub.f32 %v3129_v4, %v1808_v3  ;;  %v1055_v37 = vmul.f32 %v2456_v6, %v1054_v33  ;;  %v1912_v58 = vld [vmem:[#allocation3] sm:$0xff] }
 0x495   : > { %v1811_v10 = vmul.f32 1.442695, %v1810_v7 }
 0x4a7   : > { %v1610_v63 = vpop.xlane.xlu0 %1609 }
 0x4a8   : > { %v3211_v1 = vmax.f32 %v3206_v61, %v1610_v63 }
 0x4aa   : > { %v1612_v2 = vsub.f32 %v3206_v61, %v3211_v1  ;;  %1717 = vst.msk [vmem:[#allocation2 + $0x30] sm:$0xff] %vm361_vm2, %v3211_v1  ;;  %1617 = vperm.xlu0 %2439, %v3211_v1   ;;  %v872_v61 = vld [vmem:[#allocation4 + $0x10] sm:$0xff] }
 0x4ac   : > { %v1613_v23 = vmul.f32 1.442695, %v1612_v2 }
 0x4ae   : > { %1065 = vperm.xlu0 %2439, %v2456_v6  }
 0x4af   : > { %v1238_v8 = vpop.permute.xlu0 %1237 }
 0x4b0   : > { %v1240_v9 = vsub.f32 %v3118_v56, %v1238_v8 }
 0x4b2   : > { %v1241_v11 = vmul.f32 1.442695, %v1240_v9  ;;  %1069 = vrot.lane.b32.xlu0 %v3057_v15, %s2711_s14 }
 0x4b3   : > { %v1428_v16 = vpop.permute.xlu0 %1427 }
 0x4b4   : > { %2457 = vpow2.f32 %v1241_v11  ;;  %v1430_v17 = vsub.f32 %v3123_v60, %v1428_v16  ;;  %v865_v60 = vmul.f32 %v3187_v43, %v864_v24 }
 0x4b5   : > { %2459 = vpow2.f32 %v1811_v10 }
 0x4b6   : > { %1259 = vrot.lane.b32.xlu0 %v3057_v15, %s2712_s1  ;;  %2461 = vpow2.f32 %v1423_v14  ;;  %v1431_v18 = vmul.f32 1.442695, %v1430_v17  ;;  %v1624_v17 = vld [vmem:[#allocation3 + $0x30] sm:$0xff] }
 0x4b7   : > { %v3248_v40 = vpop.permute.xlu0 %875 }
 0x4b8   : > { %2463 = vpow2.f32 %v1431_v18  ;;  %v878_v6 = vmul.f32 %v3248_v40, %v872_v61 }
 0x4ba   : > { %1449 = vrot.lane.b32.xlu0 %v3057_v15, %s2713_s22 }
 0x4be   : > { %v2458_v12 = vpop.eup %2457  ;;  %1639 = vrot.lane.b32.xlu0 %v3057_v15, %s2714_s23 }
 0x4bf   : > { %v1246_v4 = vsel %vm470_vm3, %v2458_v12, 0.0  ;;  %v3229_v56 = vpop.eup %2459 }
 0x4c0   : > { %1247 = vadd.xlane.f32.xlu1 %v1246_v4  ;;  %v1816_v13 = vsel %vm470_vm3, %v3229_v56, 0.0  ;;  %v3239_v19 = vpop.eup %2461 }
 0x4c2   : > { %1829 = vrot.lane.b32.xlu0 %v3057_v15, %s2715_s20  ;;  %v2464_v21 = vpop.eup %2463 }
 0x4c3   : > { %v1436_v15 = vsel %vm470_vm3, %v2464_v21, 0.0 }
 0x4c4   : > { %1817 = vadd.xlane.f32.xlu1 %v1816_v13 }
 0x4d5   : > { %1445 = vperm.xlu1 %2440, %v3239_v19  }
 0x4e1   : > { %1437 = vadd.xlane.f32.xlu0 %v1436_v15 }
 0x518   : > { %v677_v31 = vpop.xlane.xlu1 %676 }
 0x519   : > { %v678_v28 = vadd.f32 %v677_v31, %v674_v26 }
 0x51b   : > { %679 = vst.msk [vmem:[#allocation3 + $0x8] sm:$0xff] %vm361_vm2, %v678_v28 }
 0x51c   : > { %v868_v29 = vpop.xlane.xlu1 %867 }
 0x51d   : > { %v869_v35 = vadd.f32 %v868_v29, %v865_v60 }
 0x51f   : > { %870 = vst.msk [vmem:[#allocation3 + $0x10] sm:$0xff] %vm361_vm2, %v869_v35 }
 0x520   : > { %v1058_v38 = vpop.xlane.xlu1 %1057 }
 0x521   : > { %v1059_v39 = vadd.f32 %v1058_v38, %v1055_v37 }
 0x522   : > { %v1921_v3 = vld [vmem:[#allocation3 + $0x8] sm:$0xff] }
 0x523   : > { %1060 = vst.msk [vmem:[#allocation3 + $0x18] sm:$0xff] %vm361_vm2, %v1059_v39 }
 0x526   : > { %v1930_v10 = vld [vmem:[#allocation3 + $0x10] sm:$0xff] }
 0x529   : > { %v1618_v27 = vpop.permute.xlu0 %1617 }
 0x52a   : > { %v1620_v42 = vsub.f32 %v3179_v36, %v1618_v27  ;;  %v1939_v11 = vld [vmem:[#allocation3 + $0x18] sm:$0xff] }
 0x52b   : > { %v1062_v27 = vld [vmem:[#allocation4 + $0x18] sm:$0xff] }
 0x52c   : > { %v1621_v5 = vmul.f32 1.442695, %v1620_v42 }
 0x52d   : > { %v3251_v45 = vpop.permute.xlu0 %1065 }
 0x52e   : > { %2465 = vpow2.f32 %v1621_v5  ;;  %v1068_v42 = vmul.f32 %v3251_v45, %v1062_v27  ;;  %v1252_v5 = vld [vmem:[#allocation4 + $0x20] sm:$0xff]  ;;  %v1632_v45 = vld [vmem:[#allocation4 + $0x30] sm:$0xff] }
 0x52f   : > { %2467 = vpow2.f32 %v1233_v49  ;;  %v1442_v49 = vld [vmem:[#allocation4 + $0x28] sm:$0xff] }
 0x530   : > { %2469 = vpow2.f32 %v1803_v51 }
 0x531   : > { %v1070_v43 = vpop.permute.xlu0 %1069  ;;  %2471 = vpow2.f32 %v1613_v23 }
 0x532   : > { %2307 = vmatpush3.msra.mxu0 %v1070_v43 }
 0x533   : > { %2309 = vmatmul.mubr.msk.f32.vlgmr.msra.gmra.mrb[6].mxu0 %vm470_vm3, %v3202_v52  ;;  %2316 = vmatprep.subr.mxu0 %v2705_v0  ;;  %v681_v52 = vld [vmem:[#allocation4 + $0x8] sm:$0xff] }
 0x534   : > { %2318 = vmatprep.mubr.msk.f32.mxu0 %vm2706_vm1, %v2705_v0  ;;  %v687_v59 = vmul.f32 %v3208_v62, %v681_v52  ;;  %v1434_v62 = vld [vmem:[#allocation3 + $0x28] sm:$0xff] }
 0x535   : > { %v1260_v41 = vpop.permute.xlu0 %1259  ;;  %v1435_v4 = vmul.f32 %v3239_v19, %v1434_v62 }
 0x536   : > { %2317 = vmatpush3.msra.mxu0 %v1260_v41 }
 0x537   : > { %2319 = vmatmul.mubr.msk.f32.vlgmr.msra.gmra.mrb[8].mxu0 %vm470_vm3, %v2458_v12  ;;  %2326 = vmatprep.subr.mxu0 %v2705_v0 }
 0x538   : > { %v2466_v36 = vpop.eup %2465  ;;  %2328 = vmatprep.mubr.msk.f32.mxu0 %vm2706_vm1, %v2705_v0 }
 0x539   : > { %v1450_v46 = vpop.permute.xlu0 %1449  ;;  %v1626_v47 = vsel %vm470_vm3, %v2466_v36, 0.0  ;;  %v2468_v25 = vpop.eup %2467 }
 0x53a   : > { %1627 = vadd.xlane.f32.xlu0 %v1626_v47  ;;  %2327 = vmatpush3.msra.mxu0 %v1450_v46  ;;  %v1245_v32 = vmul.f32 %v2468_v25, %v1244_v30  ;;  %v2470_v34 = vpop.eup %2469 }
 0x53b   : > { %2329 = vmatmul.mubr.msk.f32.vlgmr.msra.gmra.mrb[10].mxu0 %vm470_vm3, %v2464_v21  ;;  %2336 = vmatprep.subr.mxu0 %v2705_v0  ;;  %v2472_v48 = vpop.eup %2471 }
 0x53c   : > { %2338 = vmatprep.mubr.msk.f32.mxu0 %vm2706_vm1, %v2705_v0  ;;  %v1625_v18 = vmul.f32 %v2472_v48, %v1624_v17 }
 0x53d   : > { %v1640_v50 = vpop.permute.xlu0 %1639 }
 0x53e   : > { %2337 = vmatpush3.msra.mxu0 %v1640_v50 }
 0x53f   : > { %2339 = vmatmul.mubr.msk.f32.vlgmr.msra.gmra.mrb[12].mxu0 %vm470_vm3, %v2466_v36  ;;  %2346 = vmatprep.subr.mxu0 %v2705_v0 }
 0x540   : > { %2348 = vmatprep.mubr.msk.f32.mxu0 %vm2706_vm1, %v2705_v0  ;;  %v1815_v0 = vmul.f32 %v2470_v34, %v1814_v54 }
 0x541   : > { %v1830_v20 = vpop.permute.xlu0 %1829 }
 0x542   : > { %2347 = vmatpush3.msra.mxu0 %v1830_v20 }
 0x543   : > { %2349 = vmatmul.mubr.msk.f32.vlgmr.msra.gmra.mrb[14].mxu0 %vm470_vm3, %v3229_v56 }
 0x54d   : > { %v1248_v53 = vpop.xlane.xlu1 %1247 }
 0x54e   : > { %v1249_v55 = vadd.f32 %v1248_v53, %v1245_v32 }
 0x550   : > { %1250 = vst.msk [vmem:[#allocation3 + $0x20] sm:$0xff] %vm361_vm2, %v1249_v55  ;;  %1255 = vperm.xlu0 %2439, %v2468_v25  }
 0x551   : > { %v1818_v57 = vpop.xlane.xlu1 %1817 }
 0x552   : > { %v1819_v44 = vadd.f32 %v1818_v57, %v1815_v0 }
 0x554   : > { %1820 = vst.msk [vmem:[#allocation3 + $0x38] sm:$0xff] %vm361_vm2, %v1819_v44  ;;  %1635 = vperm.xlu0 %2439, %v2472_v48   ;;  %v1822_v44 = vld [vmem:[#allocation4 + $0x38] sm:$0xff] }
 0x555   : > { %v1446_v50 = vpop.permute.xlu1 %1445 }
 0x556   : > { %v1448_v30 = vmul.f32 %v1446_v50, %v1442_v49 }
 0x557   : > { %v1948_v12 = vld [vmem:[#allocation3 + $0x20] sm:$0xff] }
 0x558   : > { %1825 = vperm.xlu0 %2439, %v2470_v34  }
 0x55b   : > { %v1975_v16 = vld [vmem:[#allocation3 + $0x38] sm:$0xff] }
 0x55c   : > { %1915 = vperm.xlu0 %2439, %v1912_v58  }
 0x55d   : > { %v761_v63 = vpop.f32.mrb[2].mxu0 }
 0x55e   : > { %v765_v1 = vadd.f32 %v761_v63, %v687_v59  ;;  %v2290_v2 = vpop.f32.mrb[3].mxu0 }
 0x560   : > { %766 = vst.msk [vmem:[#allocation4 + $0x8] sm:$0xff] %vm378_vm0, %v765_v1  ;;  %1924 = vperm.xlu0 %2439, %v1921_v3  }
 0x561   : > { %v951_v7 = vpop.f32.mrb[4].mxu0 }
 0x562   : > { %v955_v8 = vadd.f32 %v951_v7, %v878_v6  ;;  %v2300_v9 = vpop.f32.mrb[5].mxu0 }
 0x564   : > { %956 = vst.msk [vmem:[#allocation4 + $0x10] sm:$0xff] %vm378_vm0, %v955_v8  ;;  %1933 = vperm.xlu0 %2439, %v1930_v10  }
 0x567   : > { %v1920_v33 = vld [vmem:[#allocation4 + $0x8] sm:$0xff] }
 0x568   : > { %1942 = vperm.xlu0 %2439, %v1939_v11  }
 0x56b   : > { %v1929_v38 = vld [vmem:[#allocation4 + $0x10] sm:$0xff] }
 0x56c   : > { %1951 = vperm.xlu0 %2439, %v1948_v12  }
 0x56e   : > { %v1438_v56 = vpop.xlane.xlu0 %1437 }
 0x56f   : > { %v1439_v13 = vadd.f32 %v1438_v56, %v1435_v4 }
 0x571   : > { %1440 = vst.msk [vmem:[#allocation3 + $0x28] sm:$0xff] %vm361_vm2, %v1439_v13 }
 0x578   : > { %v1957_v14 = vld [vmem:[#allocation3 + $0x28] sm:$0xff] }
 0x579   : > { %1960 = vperm.xlu0 %2439, %v1957_v14  }
 0x57d   : > { %1978 = vperm.xlu0 %2439, %v1975_v16  }
 0x5c7   : > { %v1628_v21 = vpop.xlane.xlu0 %1627 }
 0x5c8   : > { %v1629_v15 = vadd.f32 %v1628_v21, %v1625_v18  ;;  %v1911_v21 = vld [vmem:[#allocation4] sm:$0xff] }
 0x5ca   : > { %1630 = vst.msk [vmem:[#allocation3 + $0x30] sm:$0xff] %vm361_vm2, %v1629_v15 }
 0x5cf   : > { %v1256_v22 = vpop.permute.xlu0 %1255 }
 0x5d0   : > { %v1258_v47 = vmul.f32 %v1256_v22, %v1252_v5 }
 0x5d1   : > { %v1966_v26 = vld [vmem:[#allocation3 + $0x30] sm:$0xff] }
 0x5d2   : > { %1969 = vperm.xlu1 %2440, %v1966_v26  }
 0x5d3   : > { %v1636_v31 = vpop.permute.xlu0 %1635 }
 0x5d4   : > { %v1638_v0 = vmul.f32 %v1636_v31, %v1632_v45 }
 0x5d7   : > { %v1826_v24 = vpop.permute.xlu0 %1825 }
 0x5d8   : > { %v1828_v1 = vmul.f32 %v1826_v24, %v1822_v44 }
 0x5db   : > { %v3291_v19 = vpop.permute.xlu0 %1915 }
 0x5df   : > { %v1925_v28 = vpop.permute.xlu0 %1924 }
 0x5e0   : > { %2473 = vrcp.f32 %v1925_v28 }
 0x5e3   : > { %v1934_v60 = vpop.permute.xlu0 %1933 }
 0x5e4   : > { %2475 = vrcp.f32 %v1934_v60 }
 0x5e7   : > { %v1943_v40 = vpop.permute.xlu0 %1942 }
 0x5e8   : > { %2477 = vrcp.f32 %v1943_v40 }
 0x5ea   : > { %v2474_v29 = vpop.eup %2473 }
 0x5eb   : > { %v1928_v35 = vmul.f32 %v2474_v29, %v1920_v33  ;;  %v1952_v41 = vpop.permute.xlu0 %1951 }
 0x5ec   : > { %2479 = vrcp.f32 %v1952_v41 }
 0x5ed   : > { %1984 = vrot.lane.b32.xlu0 %v1928_v35, %s2715_s20 }
 0x5ee   : > { %v2476_v37 = vpop.eup %2475 }
 0x5ef   : > { %v1937_v39 = vmul.f32 %v2476_v37, %v1929_v38 }
 0x5f1   : > { %1988 = vrot.lane.b32.xlu0 %v1937_v39, %s2714_s23 }
 0x5f2   : > { %v2478_v54 = vpop.eup %2477 }
 0x5f6   : > { %v2480_v61 = vpop.eup %2479 }
 0x5f8   : > { %v1961_v20 = vpop.permute.xlu0 %1960 }
 0x5f9   : > { %2481 = vrcp.f32 %v1961_v20 }
 0x5fc   : > { %v1979_v52 = vpop.permute.xlu0 %1978 }
 0x5fd   : > { %2483 = vrcp.f32 %v1979_v52 }
 0x603   : > { %v2482_v8 = vpop.eup %2481 }
 0x606   : > { %v1141_v43 = vpop.f32.mrb[6].mxu0 }
 0x607   : > { %v1145_v36 = vadd.f32 %v1141_v43, %v1068_v42  ;;  %v2310_v46 = vpop.f32.mrb[7].mxu0  ;;  %v2484_v11 = vpop.eup %2483 }
 0x609   : > { %1146 = vst.msk [vmem:[#allocation4 + $0x18] sm:$0xff] %vm378_vm0, %v1145_v36 }
 0x60a   : > { %v1331_v51 = vpop.f32.mrb[8].mxu0 }
 0x60b   : > { %v1335_v23 = vadd.f32 %v1331_v51, %v1258_v47  ;;  %v2320_v25 = vpop.f32.mrb[9].mxu0 }
 0x60d   : > { %1336 = vst.msk [vmem:[#allocation4 + $0x20] sm:$0xff] %vm378_vm0, %v1335_v23 }
 0x60e   : > { %v1521_v32 = vpop.f32.mrb[10].mxu0 }
 0x60f   : > { %v1525_v34 = vadd.f32 %v1521_v32, %v1448_v30  ;;  %v2330_v53 = vpop.f32.mrb[11].mxu0 }
 0x610   : > { %v1938_v55 = vld [vmem:[#allocation4 + $0x18] sm:$0xff] }
 0x611   : > { %1526 = vst.msk [vmem:[#allocation4 + $0x28] sm:$0xff] %vm378_vm0, %v1525_v34  ;;  %v1946_v57 = vmul.f32 %v2478_v54, %v1938_v55 }
 0x612   : > { %v1711_v48 = vpop.f32.mrb[12].mxu0 }
 0x613   : > { %v1715_v58 = vadd.f32 %v1711_v48, %v1638_v0  ;;  %v2340_v59 = vpop.f32.mrb[13].mxu0  ;;  %1992 = vrot.lane.b32.xlu0 %v1946_v57, %s2713_s22 }
 0x614   : > { %v1947_v63 = vld [vmem:[#allocation4 + $0x20] sm:$0xff] }
 0x615   : > { %1716 = vst.msk [vmem:[#allocation4 + $0x30] sm:$0xff] %vm378_vm0, %v1715_v58  ;;  %v1955_v2 = vmul.f32 %v2480_v61, %v1947_v63 }
 0x616   : > { %v1901_v3 = vpop.f32.mrb[14].mxu0 }
 0x617   : > { %v1905_v6 = vadd.f32 %v1901_v3, %v1828_v1  ;;  %v2350_v7 = vpop.f32.mrb[15].mxu0  ;;  %1996 = vrot.lane.b32.xlu1 %v1955_v2, %s2712_s1 }
 0x618   : > { %v1956_v9 = vld [vmem:[#allocation4 + $0x28] sm:$0xff] }
 0x619   : > { %1906 = vst.msk [vmem:[#allocation4 + $0x38] sm:$0xff] %vm378_vm0, %v1905_v6  ;;  %v1964_v10 = vmul.f32 %v2482_v8, %v1956_v9 }
 0x61b   : > { %2000 = vrot.lane.b32.xlu0 %v1964_v10, %s2711_s14 }
 0x61c   : > { %v1965_v13 = vld [vmem:[#allocation4 + $0x30] sm:$0xff] }
 0x620   : > { %v1974_v62 = vld [vmem:[#allocation4 + $0x38] sm:$0xff] }
 0x621   : > { %v1982_v12 = vmul.f32 %v2484_v11, %v1974_v62 }
 0x623   : > { %2008 = vrot.lane.b32.xlu0 %v1982_v12, %s2709_s21 }
 0x651   : > { %v1970_v4 = vpop.permute.xlu1 %1969 }
 0x652   : > { %2485 = vrcp.f32 %v1970_v4 }
 0x653   : > { %2487 = vrcp.f32 %v3291_v19 }
 0x65c   : > { %v2486_v56 = vpop.eup %2485 }
 0x65d   : > { %v1973_v14 = vmul.f32 %v2486_v56, %v1965_v13  ;;  %v2488_v18 = vpop.eup %2487 }
 0x65e   : > { %v1919_v22 = vmul.f32 %v2488_v18, %v1911_v21 }
 0x65f   : > { %2004 = vrot.lane.b32.xlu1 %v1973_v14, %s2710_s27  ;;  %v1985_v16 = vpop.permute.xlu0 %1984 }
 0x660   : > { %v2011_v26 = vsel %vm378_vm0, %v1919_v22, %v1985_v16 }
 0x663   : > { %v1989_v17 = vpop.permute.xlu0 %1988 }
 0x664   : > { %v2013_v24 = vsel %vm2012_vm4, %v2011_v26, %v1989_v17 }
 0x685   : > { %v1993_v15 = vpop.permute.xlu0 %1992 }
 0x686   : > { %v2015_v60 = vsel %vm2014_vm5, %v2013_v24, %v1993_v15 }
 0x689   : > { %v1997_v31 = vpop.permute.xlu1 %1996 }
 0x68a   : > { %v2017_v19 = vsel %vm2016_vm6, %v2015_v60, %v1997_v31 }
 0x68d   : > { %v2001_v28 = vpop.permute.xlu0 %2000 }
 0x68e   : > { %v2019_v29 = vsel %vm2018_vm7, %v2017_v19, %v2001_v28 }
 0x695   : > { %v2009_v35 = vpop.permute.xlu0 %2008 }
 0x6d1   : > { %v2005_v33 = vpop.permute.xlu1 %2004 }
 0x6d2   : > { %v2021_v37 = vsel %vm2020_vm8, %v2019_v29, %v2005_v33 }
 0x6d3   : > { %v2023_v38 = vsel %vm2022_vm9, %v2021_v37, %v2009_v35 }
 0x6d4   : > { %2024 = vst [vmem:[%s356_s5] sm:$0xff] %v2023_v38 }
 0x6d5   : > { %2622 = shalt.err (!%p2619_p5)
}
 0x6d6   : > { %s2623_s25 = scalar_lea.hbm %s3313_s19, 128  ;;  %s2627_s26 = scalar_lea.hbm %s3366_s4, 256 }
 0x6d7   : > { %p2624_p0 = scmp.ne.s32.totalorder %s3313_s19, %s2623_s25  ;;  %p2628_p12 = scmp.lt.u32.totalorder %s3313_s19, %s3366_s4 }
 0x6d8   : > { %p2629_p10 = scmp.lt.u32.totalorder %s2627_s26, %s2623_s25  ;;  %p2631_p7 = scmp.lt.u32.totalorder %s2623_s25, %s3313_s19 }
 0x6d9   : > { %p2625_p3 = pnand %p2624_p0, %p3396_p8 }
 0x6da   : > { %p2630_p4 = por %p2629_p10, %p2628_p12 }
 0x6db   : > { %p2626_p1 = pneg %p2625_p3 }
 0x6dc   : > { %p2632_p9 = por %p2631_p7, %p2630_p4 }
 0x6de   : > { %p2633_p6 = pnand %p2632_p9, %p2626_p1 }
 0x6e0   : > { %2636 = shalt.err (!%p2633_p6)
}
 0x6e1   : > { %2359 = dma.vmem_to_hbm [thread:$0]  (%p3396_p8), %s3315_s6, 128, %s3313_s19, %s2026_s18  }
 0x6e2 PF: > { %s3397_s27 = sld [smem:[#allocation20_spill]]  ;;  %s2052_s14 = sand.u32 1, %s2679_s15  }
 0x6e3   : > { %p3398_p13 = scmp.ne.s32.totalorder %s3385_s30, 0  ;;  %s2053_s1 = scalar_lea.sflag [#allocation7], %s2052_s14 }
 0x6e8   : > { %p3399_p11 = scmp.ge.s32.totalorder %s3397_s27, 2 }
 0x6ea   : > { %p2375_p2 = pnand %p3399_p11, %p3398_p13 }
 0x6ec   : > { %2674 = dma.done.wait (!%p2375_p2), %s2053_s1, 128  }
 0x6ed   : > { %2676 = vsyncadd (!%p2375_p2), %s2053_s1, 4294967168  ;;  %s26_s20 = sadd.s32 1, %s3397_s27   ;;  %s3400_s22 = sld [smem:[#allocation18_spill]] }
 0x6ee   : > { %p23_p5 = scmp.ge.s32.totalorder %s26_s20, 4   ;;  %s3401_s17 = sld [smem:[#allocation22_spill]] }
 0x6ef   : > { %s3402_s18 = sld [smem:[#allocation19_spill]]  ;;  %s3403_s19 = sld [smem:[#allocation21_spill]] }
 0x6f0   : > { %s3404_s15 = smov %s2683_s16  ;;  %25 = sbr.rel (!%p23_p5) target bundleno = 12 (0xc), region = 147 }
 0x6f3   : > { %s3405_s16 = smov %s3400_s22 }
 0x6f7   :  { %2058 = vsyncpa [#allocation6], 1 }
 0x6f8   :  { %2060 = vsyncpa [#allocation6 + $0x1], 1 }
 0x6f9   :  { %2061 = vsyncpa [#allocation9], 1 }
 0x6fa   :  { %2063 = vsyncpa [#allocation9 + $0x1], 1 }
 0x6fb   :  { %2064 = vsyncpa [#allocation12], 1 }
 0x6fc   :  { %2066 = vsyncpa [#allocation12 + $0x1], 1 }
 0x6fd   :  { %2067 = vsyncpa [#allocation7], 1 }
 0x6fe   :  { %2069 = vsyncpa [#allocation7 + $0x1], 1 }

</bundles_post_ra>
